<compile_context>
chip_gen: v7x
topology: tpu7x:2x2x1
jax: 0.10.0
libtpu: 0.0.40
codegen_flags: <defaults>
</compile_context>

<pallas_src>
import functools

import jax
import jax.numpy as jnp
from jax.experimental import pallas as pl
from jax.experimental.pallas import tpu as pltpu

LANE = 128
SUB = 8


def round_up(x, m):
    return ((x + m - 1) // m) * m


@functools.lru_cache(maxsize=None)
def vmem_limit_bytes():
    """Per-generation scoped VMEM budget (conservative on v7x's 64 MiB)."""
    try:
        kind = jax.devices()[0].device_kind.lower()
    except Exception:
        kind = ""
    if "v5 lite" in kind or "v5e" in kind or "v6" in kind:
        return 96 * 1024 * 1024
    return 48 * 1024 * 1024


def pick_row_tile(hw, cap):
    """Largest multiple-of-8 divisor of hw that is <= cap (full hw otherwise)."""
    best = None
    t = SUB
    while t <= min(cap, hw):
        if hw % t == 0:
            best = t
        t += SUB
    return best if best is not None else hw


# ----------------------------------------------------------------------------
# Pallas kernels
# ----------------------------------------------------------------------------
def _conv_mm_kernel(x_ref, w_ref, s_ref, b_ref, o_ref, *, relu):
    """out = act((x @ w) * scale + bias) on one (thw, K)x(K, cout) block."""
    y = jnp.dot(x_ref[...], w_ref[...], preferred_element_type=jnp.float32)
    y = y * s_ref[...] + b_ref[...]
    if relu:
        y = jnp.maximum(y, 0.0)
    o_ref[...] = y.astype(o_ref.dtype)


def _conv_mm_pos_kernel(x_ref, w_ref, s_ref, b_ref, pos_ref, o_ref, *, relu):
    """Same as above plus an f32 pos_embed add fused into the epilogue."""
    y = jnp.dot(x_ref[...], w_ref[...], preferred_element_type=jnp.float32)
    y = y * s_ref[...] + b_ref[...]
    if relu:
        y = jnp.maximum(y, 0.0)
    o_ref[...] = (y + pos_ref[...]).astype(o_ref.dtype)


def _ffn_kernel(x_ref, w1_ref, s1_ref, b1_ref, w2_ref, s2_ref, b2_ref, o_ref):
    """Fused FFN block on one resident (thw, C) tile:
       out = (relu(x@w1*s1+b1) @ w2) * s2 + b2 + x."""
    x = x_ref[...]
    h = jnp.dot(x, w1_ref[...], preferred_element_type=jnp.float32)
    h = jnp.maximum(h * s1_ref[...] + b1_ref[...], 0.0)
    y = jnp.dot(h.astype(jnp.bfloat16), w2_ref[...],
                preferred_element_type=jnp.float32)
    y = y * s2_ref[...] + b2_ref[...] + x.astype(jnp.float32)
    o_ref[...] = y.astype(o_ref.dtype)


def _ffn_gap_kernel(x_ref, w1_ref, s1_ref, b1_ref, w2_ref, s2_ref, b2_ref,
                    pooled_ref, acc_ref, *, inv_count):
    """Last FFN block with the global average pool fused into its epilogue."""
    j = pl.program_id(1)

    @pl.when(j == 0)
    def _():
        acc_ref[...] = jnp.zeros_like(acc_ref)

    x = x_ref[...]
    h = jnp.dot(x, w1_ref[...], preferred_element_type=jnp.float32)
    h = jnp.maximum(h * s1_ref[...] + b1_ref[...], 0.0)
    y = jnp.dot(h.astype(jnp.bfloat16), w2_ref[...],
                preferred_element_type=jnp.float32)
    y = y * s2_ref[...] + b2_ref[...] + x.astype(jnp.float32)
    acc_ref[...] += jnp.sum(y, axis=0, keepdims=True)

    @pl.when(j == pl.num_programs(1) - 1)
    def _():
        pooled_ref[...] = acc_ref[...] * inv_count


def _gap_kernel(x_ref, o_ref, acc_ref, *, inv_count):
    """Stand-alone GAP (only used when n_blocks == 0)."""
    j = pl.program_id(1)

    @pl.when(j == 0)
    def _():
        acc_ref[...] = jnp.zeros_like(acc_ref)

    acc_ref[...] += jnp.sum(x_ref[...].astype(jnp.float32), axis=0,
                            keepdims=True)

    @pl.when(j == pl.num_programs(1) - 1)
    def _():
        o_ref[...] = acc_ref[...] * inv_count


def _head_kernel(x_ref, w1_ref, s1_ref, b1_ref, w2_ref, b2_ref, o_ref):
    """Fused prediction head: relu(pooled@w1*s1+b1) @ w2 + b2 (Dropout=eval)."""
    h = jnp.dot(x_ref[...], w1_ref[...], preferred_element_type=jnp.float32)
    h = jnp.maximum(h * s1_ref[...] + b1_ref[...], 0.0)
    y = jnp.dot(h.astype(jnp.bfloat16), w2_ref[...],
                preferred_element_type=jnp.float32)
    o_ref[...] = y + b2_ref[...]


# ----------------------------------------------------------------------------
# Kernel wrappers
# ----------------------------------------------------------------------------
def conv3x3_bn_act(x_nhwc, layer, pos=None):
    """3x3 conv (pad=1), folded eval-BN, optional ReLU / fused pos_embed add.

    im2col patches (true channel count, bf16) are built by XLA; the matmul and
    the whole epilogue run in one Pallas call over (batch, row-tile) blocks
    with full K and full cout per block (x is streamed from HBM exactly once).
    """
    w, scale, bias, stride, relu = layer
    n, h, wdt, cin = x_nhwc.shape
    xp = jnp.pad(x_nhwc, ((0, 0), (1, 1), (1, 1), (0, 0)))
    ho = (h + 2 - 3) // stride + 1
    wo = (wdt + 2 - 3) // stride + 1
    cols = []
    for kh in range(3):
        for kw in range(3):
            cols.append(xp[:, kh:kh + stride * (ho - 1) + 1:stride,
                           kw:kw + stride * (wo - 1) + 1:stride, :])
    k_real = 9 * cin
    kp = w.shape[0]                      # K already rounded up to a 128 multiple
    if kp != k_real:                     # pad K inside the concat (no extra pass)
        cols.append(jnp.zeros((n, ho, wo, kp - k_real), x_nhwc.dtype))
    rows = jnp.concatenate(cols, axis=-1).reshape(n, ho * wo, kp)

    cout = w.shape[1]
    hw = ho * wo
    thw = pick_row_tile(hw, cap=1024)
    grid = (n, hw // thw)
    in_specs = [
        pl.BlockSpec((None, thw, kp), lambda b, j: (b, j, 0)),
        pl.BlockSpec((kp, cout), lambda b, j: (0, 0)),
        pl.BlockSpec((1, cout), lambda b, j: (0, 0)),
        pl.BlockSpec((1, cout), lambda b, j: (0, 0)),
    ]
    args = [rows, w, scale.reshape(1, cout), bias.reshape(1, cout)]
    if pos is None:
        kern = functools.partial(_conv_mm_kernel, relu=relu)
    else:
        kern = functools.partial(_conv_mm_pos_kernel, relu=relu)
        in_specs.append(pl.BlockSpec((None, thw, cout), lambda b, j: (0, j, 0)))
        args.append(pos)

    out = pl.pallas_call(
        kern,
        out_shape=jax.ShapeDtypeStruct((n, hw, cout), jnp.bfloat16),
        grid=grid,
        in_specs=in_specs,
        out_specs=pl.BlockSpec((None, thw, cout), lambda b, j: (b, j, 0)),
        compiler_params=pltpu.CompilerParams(
            dimension_semantics=("parallel", "parallel"),
            vmem_limit_bytes=vmem_limit_bytes()),
    )(*args)
    return out.reshape(n, ho, wo, cout)


def ffn_block(x_nhwc, blk, *, fuse_gap=False):
    """Both 1x1 convs of the FFN in one pallas_call over (batch, row-tile)
    blocks; when fuse_gap=True the global average pool is fused as well and
    only the pooled (N, C) result is written back to HBM."""
    n, h, wdt, c = x_nhwc.shape
    hw = h * wdt
    hd = blk["w1"].shape[1]
    rows = x_nhwc.reshape(n, hw, c)
    thw = pick_row_tile(hw, cap=512)     # keeps (thw, 4C) f32 hidden in budget
    grid = (n, hw // thw)
    in_specs = [
        pl.BlockSpec((None, thw, c), lambda b, j: (b, j, 0)),
        pl.BlockSpec((c, hd), lambda b, j: (0, 0)),
        pl.BlockSpec((1, hd), lambda b, j: (0, 0)),
        pl.BlockSpec((1, hd), lambda b, j: (0, 0)),
        pl.BlockSpec((hd, c), lambda b, j: (0, 0)),
        pl.BlockSpec((1, c), lambda b, j: (0, 0)),
        pl.BlockSpec((1, c), lambda b, j: (0, 0)),
    ]
    args = (rows, blk["w1"], blk["s1"].reshape(1, hd), blk["b1"].reshape(1, hd),
            blk["w2"], blk["s2"].reshape(1, c), blk["b2"].reshape(1, c))

    if not fuse_gap:
        out = pl.pallas_call(
            _ffn_kernel,
            out_shape=jax.ShapeDtypeStruct((n, hw, c), jnp.bfloat16),
            grid=grid,
            in_specs=in_specs,
            out_specs=pl.BlockSpec((None, thw, c), lambda b, j: (b, j, 0)),
            compiler_params=pltpu.CompilerParams(
                dimension_semantics=("parallel", "parallel"),
                vmem_limit_bytes=vmem_limit_bytes()),
        )(*args)
        return out.reshape(n, h, wdt, c)

    pooled = pl.pallas_call(
        functools.partial(_ffn_gap_kernel, inv_count=1.0 / hw),
        out_shape=jax.ShapeDtypeStruct((n, 1, c), jnp.float32),
        grid=grid,
        in_specs=in_specs,
        out_specs=pl.BlockSpec((None, 1, c), lambda b, j: (b, 0, 0)),
        scratch_shapes=[pltpu.VMEM((1, c), jnp.float32)],
        compiler_params=pltpu.CompilerParams(
            dimension_semantics=("parallel", "arbitrary"),
            vmem_limit_bytes=vmem_limit_bytes()),
    )(*args)
    return pooled.reshape(n, c)


def global_avg_pool(x_nhwc):
    """F.adaptive_avg_pool2d(x, 1) -> (B, C) (only used when n_blocks == 0)."""
    n, h, wdt, c = x_nhwc.shape
    hw = h * wdt
    rows = x_nhwc.reshape(n, hw, c)
    thw = pick_row_tile(hw, cap=1024)
    pooled = pl.pallas_call(
        functools.partial(_gap_kernel, inv_count=1.0 / hw),
        out_shape=jax.ShapeDtypeStruct((n, 1, c), jnp.float32),
        grid=(n, hw // thw),
        in_specs=[pl.BlockSpec((None, thw, c), lambda b, j: (b, j, 0))],
        out_specs=pl.BlockSpec((None, 1, c), lambda b, j: (b, 0, 0)),
        scratch_shapes=[pltpu.VMEM((1, c), jnp.float32)],
        compiler_params=pltpu.CompilerParams(
            dimension_semantics=("parallel", "arbitrary"),
            vmem_limit_bytes=vmem_limit_bytes()),
    )(rows)
    return pooled.reshape(n, c)


def prediction_head(pooled, p1, p2, n_classes):
    """Fused 1x1conv+BN+ReLU -> 1x1conv head; hidden stays in VMEM."""
    b, c = pooled.shape
    w1, s1, b1 = p1
    w2, b2 = p2
    hd = w1.shape[1]
    ncp = w2.shape[1]
    bp = round_up(b, SUB)
    x = jnp.pad(pooled.astype(jnp.bfloat16), ((0, bp - b), (0, 0)))
    out = pl.pallas_call(
        _head_kernel,
        out_shape=jax.ShapeDtypeStruct((bp, ncp), jnp.float32),
        grid=(1,),
        in_specs=[
            pl.BlockSpec((bp, c), lambda i: (0, 0)),
            pl.BlockSpec((c, hd), lambda i: (0, 0)),
            pl.BlockSpec((1, hd), lambda i: (0, 0)),
            pl.BlockSpec((1, hd), lambda i: (0, 0)),
            pl.BlockSpec((hd, ncp), lambda i: (0, 0)),
            pl.BlockSpec((1, ncp), lambda i: (0, 0)),
        ],
        out_specs=pl.BlockSpec((bp, ncp), lambda i: (0, 0)),
        compiler_params=pltpu.CompilerParams(
            dimension_semantics=("arbitrary",),
            vmem_limit_bytes=vmem_limit_bytes()),
    )(x, w1, s1.reshape(1, hd), b1.reshape(1, hd), w2, b2.reshape(1, ncp))
    return out[:b, :n_classes]


# ----------------------------------------------------------------------------
# Parameter construction (kaiming conv weights, zero conv bias, default BN,
# zero pos_embed).  Weights are cast to bf16 ONCE; eval-mode BN is folded to
# f32 per-channel scale/bias at init.  No channel padding anywhere; only the
# im2col K of the stem convs and the class dim of the final head are padded.
# ----------------------------------------------------------------------------
def default_bn(c, eps=1e-5):
    return (jnp.ones((c,), jnp.float32), jnp.zeros((c,), jnp.float32),
            jnp.zeros((c,), jnp.float32), jnp.ones((c,), jnp.float32), eps)


def fold_bn(bn, conv_bias):
    gamma, beta, mean, var, eps = bn
    scale = gamma / jnp.sqrt(var + eps)
    bias = beta + (conv_bias - mean) * scale
    return scale, bias


def kaiming_conv(key, cout, cin, k):
    fan_in = cin * k * k
    std = (2.0 / fan_in) ** 0.5
    w = jax.random.normal(key, (cout, cin, k, k), jnp.float32) * std
    b = jnp.zeros((cout,), jnp.float32)
    return w, b


def prep_conv3x3(w_oihw, b_conv, bn, *, stride, relu):
    cout, cin = w_oihw.shape[0], w_oihw.shape[1]
    w = jnp.transpose(w_oihw, (2, 3, 1, 0)).reshape(9 * cin, cout)
    kp = round_up(9 * cin, LANE)
    w = jnp.pad(w, ((0, kp - 9 * cin), (0, 0))).astype(jnp.bfloat16)
    scale, bias = fold_bn(bn, b_conv)
    return (w, scale, bias, stride, relu)


def prep_conv1x1(w_oihw, b_conv, bn):
    w = w_oihw[:, :, 0, 0].T.astype(jnp.bfloat16)
    scale, bias = fold_bn(bn, b_conv)
    return w, scale, bias


def init_params(key, *, in_dim, channels, n_blocks, n_classes, hs, ws):
    keys = iter(jax.random.split(key, 2 * n_blocks + 8))
    p = {}

    # Stem: 4x (3x3 s2 conv + BN + ReLU) then 3x3 s1 conv + BN
    stem_dims = [in_dim, channels // 8, channels // 4, channels // 2,
                 channels, channels]
    stem = []
    for i in range(5):
        cin, cout = stem_dims[i], stem_dims[i + 1]
        w, b = kaiming_conv(next(keys), cout, cin, 3)
        stem.append(prep_conv3x3(w, b, default_bn(cout),
                                 stride=2 if i < 4 else 1, relu=i < 4))
    p["stem"] = stem

    # pos_embed (torch: zeros(1, channels, 14, 14); sized to stem output here)
    p["pos_embed"] = jnp.zeros((1, hs * ws, channels), jnp.float32)

    # Backbone FFN blocks (Grapher omitted -- see TODO at top)
    blocks = []
    for _ in range(n_blocks):
        w1, b1 = kaiming_conv(next(keys), 4 * channels, channels, 1)
        w2, b2 = kaiming_conv(next(keys), channels, 4 * channels, 1)
        w1m, s1, bi1 = prep_conv1x1(w1, b1, default_bn(4 * channels))
        w2m, s2, bi2 = prep_conv1x1(w2, b2, default_bn(channels))
        blocks.append({"w1": w1m, "s1": s1, "b1": bi1,
                       "w2": w2m, "s2": s2, "b2": bi2})
    p["blocks"] = blocks

    # Prediction head (classes padded to a lane multiple at the weight level)
    nc_pad = round_up(n_classes, LANE)
    wp1, bp1 = kaiming_conv(next(keys), 1024, channels, 1)
    wp2, bp2 = kaiming_conv(next(keys), n_classes, 1024, 1)
    w1m, s1, bi1 = prep_conv1x1(wp1, bp1, default_bn(1024))
    w2m = jnp.pad(wp2[:, :, 0, 0].T,
                  ((0, 0), (0, nc_pad - n_classes))).astype(jnp.bfloat16)
    b2m = jnp.pad(bp2, (0, nc_pad - n_classes))
    p["pred1"] = (w1m, s1, bi1)
    p["pred2"] = (w2m, b2m)
    p["n_classes"] = n_classes
    return p


# ----------------------------------------------------------------------------
# Forward pass (matches DeepGCN.forward, eval-mode BN / Dropout / DropPath)
# ----------------------------------------------------------------------------
def deep_gcn_forward(inputs_nchw, params):
    x = jnp.transpose(inputs_nchw, (0, 2, 3, 1)).astype(jnp.bfloat16)  # NHWC

    # Stem: first four convs (stride 2, ReLU)
    for layer in params["stem"][:-1]:
        x = conv3x3_bn_act(x, layer)
    # Last stem conv (stride 1, no ReLU) with pos_embed fused into the epilogue
    x = conv3x3_bn_act(x, params["stem"][-1], pos=params["pos_embed"])

    # Backbone: FFN blocks (Grapher omitted); GAP fused into the last block.
    blocks = params["blocks"]
    if blocks:
        for blk in blocks[:-1]:
            x = ffn_block(x, blk)
        pooled = ffn_block(x, blocks[-1], fuse_gap=True)       # (B, C) f32
    else:
        pooled = global_avg_pool(x)

    # Prediction head (fused; Dropout is eval-mode identity)
    logits = prediction_head(pooled, params["pred1"], params["pred2"],
                             params["n_classes"])
    return logits  # (B, n_classes), equivalent to .squeeze(-1).squeeze(-1)


# ----------------------------------------------------------------------------
if __name__ == "__main__":
    B, IN_DIM, IMG = 2, 3, 32          # stem downsamples 16x -> 2x2 tokens
    CHANNELS = 32                      # opt.n_filters
    N_BLOCKS = 2                       # opt.n_blocks
    N_CLASSES = 10                     # opt.n_classes
    HS = WS = IMG // 16                # stem output spatial size

    key = jax.random.PRNGKey(0)
    k_inp, k_par = jax.random.split(key)
    inputs = jax.random.normal(k_inp, (B, IN_DIM, IMG, IMG), jnp.float32)
    params = init_params(k_par, in_dim=IN_DIM, channels=CHANNELS,
                         n_blocks=N_BLOCKS, n_classes=N_CLASSES, hs=HS, ws=WS)

    fwd = jax.jit(lambda inp: deep_gcn_forward(inp, params))
    out = jax.block_until_ready(fwd(inputs))
    assert out.shape == (B, N_CLASSES)
    print("KERNEL_OK")
</pallas_src>

<mosaic_0001>
module attributes {stable_mosaic.version = 11 : i64} {
  func.func @_conv_mm_kernel(%arg0: i32, %arg1: i32, %arg2: memref<1x256x128xbf16, #tpu.memory_space<vmem>>, %arg3: memref<128x4xbf16, #tpu.memory_space<vmem>>, %arg4: memref<1x4xf32, #tpu.memory_space<vmem>>, %arg5: memref<1x4xf32, #tpu.memory_space<vmem>>, %arg6: memref<1x256x4xbf16, #tpu.memory_space<vmem>>) attributes {dimension_semantics = [#tpu.dimension_semantics<parallel>, #tpu.dimension_semantics<parallel>], iteration_bounds = array<i64: 2, 1>, scalar_prefetch = 0 : i64, scratch_operands = 0 : i64, tpu.core_type = #tpu.core_type<tc>, window_params = [{transform_indices = @transform_0, window_bounds = array<i64: 1, 256, 128>}, {pipeline_mode = #tpu.pipeline_mode<synchronous>, transform_indices = @transform_1, window_bounds = array<i64: 128, 4>}, {pipeline_mode = #tpu.pipeline_mode<synchronous>, transform_indices = @transform_2, window_bounds = array<i64: 1, 4>}, {pipeline_mode = #tpu.pipeline_mode<synchronous>, transform_indices = @transform_3, window_bounds = array<i64: 1, 4>}, {transform_indices = @transform_4, window_bounds = array<i64: 1, 256, 4>}]} {
    %c0 = arith.constant 0 : index
    %c0_0 = arith.constant 0 : index
    %c0_1 = arith.constant 0 : index
    %0 = vector.load %arg2[%c0, %c0_0, %c0_1] : memref<1x256x128xbf16, #tpu.memory_space<vmem>>, vector<1x256x128xbf16>
    %1 = vector.shape_cast %0 : vector<1x256x128xbf16> to vector<256x128xbf16>
    %c0_2 = arith.constant 0 : index
    %c0_3 = arith.constant 0 : index
    %2 = vector.load %arg3[%c0_2, %c0_3] : memref<128x4xbf16, #tpu.memory_space<vmem>>, vector<128x4xbf16>
    %cst = arith.constant dense<0.000000e+00> : vector<256x4xf32>
    %3 = tpu.matmul %1, %2, %cst {dimension_numbers = #tpu.dot_dimension_numbers<[1], [0], [0], [1], [0, 0, 1, 1], [], []>} : vector<256x128xbf16>, vector<128x4xbf16>, vector<256x4xf32> -> vector<256x4xf32>
    %c0_4 = arith.constant 0 : index
    %c0_5 = arith.constant 0 : index
    %4 = vector.load %arg4[%c0_4, %c0_5] : memref<1x4xf32, #tpu.memory_space<vmem>>, vector<1x4xf32>
    %5 = vector.broadcast %4 : vector<1x4xf32> to vector<256x4xf32>
    %6 = arith.mulf %3, %5 : vector<256x4xf32>
    %c0_6 = arith.constant 0 : index
    %c0_7 = arith.constant 0 : index
    %7 = vector.load %arg5[%c0_6, %c0_7] : memref<1x4xf32, #tpu.memory_space<vmem>>, vector<1x4xf32>
    %8 = vector.broadcast %7 : vector<1x4xf32> to vector<256x4xf32>
    %9 = arith.addf %6, %8 : vector<256x4xf32>
    %cst_8 = arith.constant 0.000000e+00 : f32
    %10 = vector.broadcast %cst_8 : f32 to vector<256x4xf32>
    %11 = arith.maximumf %9, %10 : vector<256x4xf32>
    %12 = arith.truncf %11 : vector<256x4xf32> to vector<256x4xbf16>
    %c0_9 = arith.constant 0 : index
    %c0_10 = arith.constant 0 : index
    %c0_11 = arith.constant 0 : index
    %13 = vector.load %arg6[%c0_9, %c0_10, %c0_11] : memref<1x256x4xbf16, #tpu.memory_space<vmem>>, vector<1x256x4xbf16>
    %14 = vector.shape_cast %13 : vector<1x256x4xbf16> to vector<256x4xbf16>
    %15 = vector.shape_cast %12 : vector<256x4xbf16> to vector<1x256x4xbf16>
    tpu.vector_store %arg6[%c0_9, %c0_10, %c0_11], %15 {strides = array<i32>} : memref<1x256x4xbf16, #tpu.memory_space<vmem>>, vector<1x256x4xbf16>,
    return
  }
  func.func @transform_0(%arg0: i32, %arg1: i32) -> (i32, i32, i32) {
    %c0_i32 = arith.constant 0 : i32
    %c0_i32_0 = arith.constant 0 : i32
    return %arg0, %arg1, %c0_i32 : i32, i32, i32
  }
  func.func @transform_1(%arg0: i32, %arg1: i32) -> (i32, i32) {
    %c0_i32 = arith.constant 0 : i32
    %c0_i32_0 = arith.constant 0 : i32
    %c0_i32_1 = arith.constant 0 : i32
    return %c0_i32, %c0_i32_0 : i32, i32
  }
  func.func @transform_2(%arg0: i32, %arg1: i32) -> (i32, i32) {
    %c0_i32 = arith.constant 0 : i32
    %c0_i32_0 = arith.constant 0 : i32
    %c0_i32_1 = arith.constant 0 : i32
    return %c0_i32, %c0_i32_0 : i32, i32
  }
  func.func @transform_3(%arg0: i32, %arg1: i32) -> (i32, i32) {
    %c0_i32 = arith.constant 0 : i32
    %c0_i32_0 = arith.constant 0 : i32
    %c0_i32_1 = arith.constant 0 : i32
    return %c0_i32, %c0_i32_0 : i32, i32
  }
  func.func @transform_4(%arg0: i32, %arg1: i32) -> (i32, i32, i32) {
    %c0_i32 = arith.constant 0 : i32
    %c0_i32_0 = arith.constant 0 : i32
    return %arg0, %arg1, %c0_i32 : i32, i32, i32
  }
}

module attributes {stable_mosaic.version = 11 : i64} {
  func.func @_conv_mm_kernel(%arg0: i32, %arg1: i32, %arg2: memref<1x64x128xbf16, #tpu.memory_space<vmem>>, %arg3: memref<128x8xbf16, #tpu.memory_space<vmem>>, %arg4: memref<1x8xf32, #tpu.memory_space<vmem>>, %arg5: memref<1x8xf32, #tpu.memory_space<vmem>>, %arg6: memref<1x64x8xbf16, #tpu.memory_space<vmem>>) attributes {dimension_semantics = [#tpu.dimension_semantics<parallel>, #tpu.dimension_semantics<parallel>], iteration_bounds = array<i64: 2, 1>, scalar_prefetch = 0 : i64, scratch_operands = 0 : i64, tpu.core_type = #tpu.core_type<tc>, window_params = [{transform_indices = @transform_0, window_bounds = array<i64: 1, 64, 128>}, {pipeline_mode = #tpu.pipeline_mode<synchronous>, transform_indices = @transform_1, window_bounds = array<i64: 128, 8>}, {pipeline_mode = #tpu.pipeline_mode<synchronous>, transform_indices = @transform_2, window_bounds = array<i64: 1, 8>}, {pipeline_mode = #tpu.pipeline_mode<synchronous>, transform_indices = @transform_3, window_bounds = array<i64: 1, 8>}, {transform_indices = @transform_4, window_bounds = array<i64: 1, 64, 8>}]} {
    %c0 = arith.constant 0 : index
    %c0_0 = arith.constant 0 : index
    %c0_1 = arith.constant 0 : index
    %0 = vector.load %arg2[%c0, %c0_0, %c0_1] : memref<1x64x128xbf16, #tpu.memory_space<vmem>>, vector<1x64x128xbf16>
    %1 = vector.shape_cast %0 : vector<1x64x128xbf16> to vector<64x128xbf16>
    %c0_2 = arith.constant 0 : index
    %c0_3 = arith.constant 0 : index
    %2 = vector.load %arg3[%c0_2, %c0_3] : memref<128x8xbf16, #tpu.memory_space<vmem>>, vector<128x8xbf16>
    %cst = arith.constant dense<0.000000e+00> : vector<64x8xf32>
    %3 = tpu.matmul %1, %2, %cst {dimension_numbers = #tpu.dot_dimension_numbers<[1], [0], [0], [1], [0, 0, 1, 1], [], []>} : vector<64x128xbf16>, vector<128x8xbf16>, vector<64x8xf32> -> vector<64x8xf32>
    %c0_4 = arith.constant 0 : index
    %c0_5 = arith.constant 0 : index
    %4 = vector.load %arg4[%c0_4, %c0_5] : memref<1x8xf32, #tpu.memory_space<vmem>>, vector<1x8xf32>
    %5 = vector.broadcast %4 : vector<1x8xf32> to vector<64x8xf32>
    %6 = arith.mulf %3, %5 : vector<64x8xf32>
    %c0_6 = arith.constant 0 : index
    %c0_7 = arith.constant 0 : index
    %7 = vector.load %arg5[%c0_6, %c0_7] : memref<1x8xf32, #tpu.memory_space<vmem>>, vector<1x8xf32>
    %8 = vector.broadcast %7 : vector<1x8xf32> to vector<64x8xf32>
    %9 = arith.addf %6, %8 : vector<64x8xf32>
    %cst_8 = arith.constant 0.000000e+00 : f32
    %10 = vector.broadcast %cst_8 : f32 to vector<64x8xf32>
    %11 = arith.maximumf %9, %10 : vector<64x8xf32>
    %12 = arith.truncf %11 : vector<64x8xf32> to vector<64x8xbf16>
    %c0_9 = arith.constant 0 : index
    %c0_10 = arith.constant 0 : index
    %c0_11 = arith.constant 0 : index
    %13 = vector.load %arg6[%c0_9, %c0_10, %c0_11] : memref<1x64x8xbf16, #tpu.memory_space<vmem>>, vector<1x64x8xbf16>
    %14 = vector.shape_cast %13 : vector<1x64x8xbf16> to vector<64x8xbf16>
    %15 = vector.shape_cast %12 : vector<64x8xbf16> to vector<1x64x8xbf16>
    tpu.vector_store %arg6[%c0_9, %c0_10, %c0_11], %15 {strides = array<i32>} : memref<1x64x8xbf16, #tpu.memory_space<vmem>>, vector<1x64x8xbf16>,
    return
  }
  func.func @transform_0(%arg0: i32, %arg1: i32) -> (i32, i32, i32) {
    %c0_i32 = arith.constant 0 : i32
    %c0_i32_0 = arith.constant 0 : i32
    return %arg0, %arg1, %c0_i32 : i32, i32, i32
  }
  func.func @transform_1(%arg0: i32, %arg1: i32) -> (i32, i32) {
    %c0_i32 = arith.constant 0 : i32
    %c0_i32_0 = arith.constant 0 : i32
    %c0_i32_1 = arith.constant 0 : i32
    return %c0_i32, %c0_i32_0 : i32, i32
  }
  func.func @transform_2(%arg0: i32, %arg1: i32) -> (i32, i32) {
    %c0_i32 = arith.constant 0 : i32
    %c0_i32_0 = arith.constant 0 : i32
    %c0_i32_1 = arith.constant 0 : i32
    return %c0_i32, %c0_i32_0 : i32, i32
  }
  func.func @transform_3(%arg0: i32, %arg1: i32) -> (i32, i32) {
    %c0_i32 = arith.constant 0 : i32
    %c0_i32_0 = arith.constant 0 : i32
    %c0_i32_1 = arith.constant 0 : i32
    return %c0_i32, %c0_i32_0 : i32, i32
  }
  func.func @transform_4(%arg0: i32, %arg1: i32) -> (i32, i32, i32) {
    %c0_i32 = arith.constant 0 : i32
    %c0_i32_0 = arith.constant 0 : i32
    return %arg0, %arg1, %c0_i32 : i32, i32, i32
  }
}

module attributes {stable_mosaic.version = 11 : i64} {
  func.func @_conv_mm_kernel(%arg0: i32, %arg1: i32, %arg2: memref<1x16x128xbf16, #tpu.memory_space<vmem>>, %arg3: memref<128x16xbf16, #tpu.memory_space<vmem>>, %arg4: memref<1x16xf32, #tpu.memory_space<vmem>>, %arg5: memref<1x16xf32, #tpu.memory_space<vmem>>, %arg6: memref<1x16x16xbf16, #tpu.memory_space<vmem>>) attributes {dimension_semantics = [#tpu.dimension_semantics<parallel>, #tpu.dimension_semantics<parallel>], iteration_bounds = array<i64: 2, 1>, scalar_prefetch = 0 : i64, scratch_operands = 0 : i64, tpu.core_type = #tpu.core_type<tc>, window_params = [{transform_indices = @transform_0, window_bounds = array<i64: 1, 16, 128>}, {pipeline_mode = #tpu.pipeline_mode<synchronous>, transform_indices = @transform_1, window_bounds = array<i64: 128, 16>}, {pipeline_mode = #tpu.pipeline_mode<synchronous>, transform_indices = @transform_2, window_bounds = array<i64: 1, 16>}, {pipeline_mode = #tpu.pipeline_mode<synchronous>, transform_indices = @transform_3, window_bounds = array<i64: 1, 16>}, {transform_indices = @transform_4, window_bounds = array<i64: 1, 16, 16>}]} {
    %c0 = arith.constant 0 : index
    %c0_0 = arith.constant 0 : index
    %c0_1 = arith.constant 0 : index
    %0 = vector.load %arg2[%c0, %c0_0, %c0_1] : memref<1x16x128xbf16, #tpu.memory_space<vmem>>, vector<1x16x128xbf16>
    %1 = vector.shape_cast %0 : vector<1x16x128xbf16> to vector<16x128xbf16>
    %c0_2 = arith.constant 0 : index
    %c0_3 = arith.constant 0 : index
    %2 = vector.load %arg3[%c0_2, %c0_3] : memref<128x16xbf16, #tpu.memory_space<vmem>>, vector<128x16xbf16>
    %cst = arith.constant dense<0.000000e+00> : vector<16x16xf32>
    %3 = tpu.matmul %1, %2, %cst {dimension_numbers = #tpu.dot_dimension_numbers<[1], [0], [0], [1], [0, 0, 1, 1], [], []>} : vector<16x128xbf16>, vector<128x16xbf16>, vector<16x16xf32> -> vector<16x16xf32>
    %c0_4 = arith.constant 0 : index
    %c0_5 = arith.constant 0 : index
    %4 = vector.load %arg4[%c0_4, %c0_5] : memref<1x16xf32, #tpu.memory_space<vmem>>, vector<1x16xf32>
    %5 = vector.broadcast %4 : vector<1x16xf32> to vector<16x16xf32>
    %6 = arith.mulf %3, %5 : vector<16x16xf32>
    %c0_6 = arith.constant 0 : index
    %c0_7 = arith.constant 0 : index
    %7 = vector.load %arg5[%c0_6, %c0_7] : memref<1x16xf32, #tpu.memory_space<vmem>>, vector<1x16xf32>
    %8 = vector.broadcast %7 : vector<1x16xf32> to vector<16x16xf32>
    %9 = arith.addf %6, %8 : vector<16x16xf32>
    %cst_8 = arith.constant 0.000000e+00 : f32
    %10 = vector.broadcast %cst_8 : f32 to vector<16x16xf32>
    %11 = arith.maximumf %9, %10 : vector<16x16xf32>
    %12 = arith.truncf %11 : vector<16x16xf32> to vector<16x16xbf16>
    %c0_9 = arith.constant 0 : index
    %c0_10 = arith.constant 0 : index
    %c0_11 = arith.constant 0 : index
    %13 = vector.load %arg6[%c0_9, %c0_10, %c0_11] : memref<1x16x16xbf16, #tpu.memory_space<vmem>>, vector<1x16x16xbf16>
    %14 = vector.shape_cast %13 : vector<1x16x16xbf16> to vector<16x16xbf16>
    %15 = vector.shape_cast %12 : vector<16x16xbf16> to vector<1x16x16xbf16>
    tpu.vector_store %arg6[%c0_9, %c0_10, %c0_11], %15 {strides = array<i32>} : memref<1x16x16xbf16, #tpu.memory_space<vmem>>, vector<1x16x16xbf16>,
    return
  }
  func.func @transform_0(%arg0: i32, %arg1: i32) -> (i32, i32, i32) {
    %c0_i32 = arith.constant 0 : i32
    %c0_i32_0 = arith.constant 0 : i32
    return %arg0, %arg1, %c0_i32 : i32, i32, i32
  }
  func.func @transform_1(%arg0: i32, %arg1: i32) -> (i32, i32) {
    %c0_i32 = arith.constant 0 : i32
    %c0_i32_0 = arith.constant 0 : i32
    %c0_i32_1 = arith.constant 0 : i32
    return %c0_i32, %c0_i32_0 : i32, i32
  }
  func.func @transform_2(%arg0: i32, %arg1: i32) -> (i32, i32) {
    %c0_i32 = arith.constant 0 : i32
    %c0_i32_0 = arith.constant 0 : i32
    %c0_i32_1 = arith.constant 0 : i32
    return %c0_i32, %c0_i32_0 : i32, i32
  }
  func.func @transform_3(%arg0: i32, %arg1: i32) -> (i32, i32) {
    %c0_i32 = arith.constant 0 : i32
    %c0_i32_0 = arith.constant 0 : i32
    %c0_i32_1 = arith.constant 0 : i32
    return %c0_i32, %c0_i32_0 : i32, i32
  }
  func.func @transform_4(%arg0: i32, %arg1: i32) -> (i32, i32, i32) {
    %c0_i32 = arith.constant 0 : i32
    %c0_i32_0 = arith.constant 0 : i32
    return %arg0, %arg1, %c0_i32 : i32, i32, i32
  }
}

module attributes {stable_mosaic.version = 11 : i64} {
  func.func @_conv_mm_kernel(%arg0: i32, %arg1: i32, %arg2: memref<1x4x256xbf16, #tpu.memory_space<vmem>>, %arg3: memref<256x32xbf16, #tpu.memory_space<vmem>>, %arg4: memref<1x32xf32, #tpu.memory_space<vmem>>, %arg5: memref<1x32xf32, #tpu.memory_space<vmem>>, %arg6: memref<1x4x32xbf16, #tpu.memory_space<vmem>>) attributes {dimension_semantics = [#tpu.dimension_semantics<parallel>, #tpu.dimension_semantics<parallel>], iteration_bounds = array<i64: 2, 1>, scalar_prefetch = 0 : i64, scratch_operands = 0 : i64, tpu.core_type = #tpu.core_type<tc>, window_params = [{transform_indices = @transform_0, window_bounds = array<i64: 1, 4, 256>}, {pipeline_mode = #tpu.pipeline_mode<synchronous>, transform_indices = @transform_1, window_bounds = array<i64: 256, 32>}, {pipeline_mode = #tpu.pipeline_mode<synchronous>, transform_indices = @transform_2, window_bounds = array<i64: 1, 32>}, {pipeline_mode = #tpu.pipeline_mode<synchronous>, transform_indices = @transform_3, window_bounds = array<i64: 1, 32>}, {transform_indices = @transform_4, window_bounds = array<i64: 1, 4, 32>}]} {
    %c0 = arith.constant 0 : index
    %c0_0 = arith.constant 0 : index
    %c0_1 = arith.constant 0 : index
    %0 = vector.load %arg2[%c0, %c0_0, %c0_1] : memref<1x4x256xbf16, #tpu.memory_space<vmem>>, vector<1x4x256xbf16>
    %1 = vector.shape_cast %0 : vector<1x4x256xbf16> to vector<4x256xbf16>
    %c0_2 = arith.constant 0 : index
    %c0_3 = arith.constant 0 : index
    %2 = vector.load %arg3[%c0_2, %c0_3] : memref<256x32xbf16, #tpu.memory_space<vmem>>, vector<256x32xbf16>
    %cst = arith.constant dense<0.000000e+00> : vector<4x32xf32>
    %3 = tpu.matmul %1, %2, %cst {dimension_numbers = #tpu.dot_dimension_numbers<[1], [0], [0], [1], [0, 0, 1, 1], [], []>} : vector<4x256xbf16>, vector<256x32xbf16>, vector<4x32xf32> -> vector<4x32xf32>
    %c0_4 = arith.constant 0 : index
    %c0_5 = arith.constant 0 : index
    %4 = vector.load %arg4[%c0_4, %c0_5] : memref<1x32xf32, #tpu.memory_space<vmem>>, vector<1x32xf32>
    %5 = vector.broadcast %4 : vector<1x32xf32> to vector<4x32xf32>
    %6 = arith.mulf %3, %5 : vector<4x32xf32>
    %c0_6 = arith.constant 0 : index
    %c0_7 = arith.constant 0 : index
    %7 = vector.load %arg5[%c0_6, %c0_7] : memref<1x32xf32, #tpu.memory_space<vmem>>, vector<1x32xf32>
    %8 = vector.broadcast %7 : vector<1x32xf32> to vector<4x32xf32>
    %9 = arith.addf %6, %8 : vector<4x32xf32>
    %cst_8 = arith.constant 0.000000e+00 : f32
    %10 = vector.broadcast %cst_8 : f32 to vector<4x32xf32>
    %11 = arith.maximumf %9, %10 : vector<4x32xf32>
    %12 = arith.truncf %11 : vector<4x32xf32> to vector<4x32xbf16>
    %c0_9 = arith.constant 0 : index
    %c0_10 = arith.constant 0 : index
    %c0_11 = arith.constant 0 : index
    %13 = vector.load %arg6[%c0_9, %c0_10, %c0_11] : memref<1x4x32xbf16, #tpu.memory_space<vmem>>, vector<1x4x32xbf16>
    %14 = vector.shape_cast %13 : vector<1x4x32xbf16> to vector<4x32xbf16>
    %15 = vector.shape_cast %12 : vector<4x32xbf16> to vector<1x4x32xbf16>
    tpu.vector_store %arg6[%c0_9, %c0_10, %c0_11], %15 {strides = array<i32>} : memref<1x4x32xbf16, #tpu.memory_space<vmem>>, vector<1x4x32xbf16>,
    return
  }
  func.func @transform_0(%arg0: i32, %arg1: i32) -> (i32, i32, i32) {
    %c0_i32 = arith.constant 0 : i32
    %c0_i32_0 = arith.constant 0 : i32
    return %arg0, %arg1, %c0_i32 : i32, i32, i32
  }
  func.func @transform_1(%arg0: i32, %arg1: i32) -> (i32, i32) {
    %c0_i32 = arith.constant 0 : i32
    %c0_i32_0 = arith.constant 0 : i32
    %c0_i32_1 = arith.constant 0 : i32
    return %c0_i32, %c0_i32_0 : i32, i32
  }
  func.func @transform_2(%arg0: i32, %arg1: i32) -> (i32, i32) {
    %c0_i32 = arith.constant 0 : i32
    %c0_i32_0 = arith.constant 0 : i32
    %c0_i32_1 = arith.constant 0 : i32
    return %c0_i32, %c0_i32_0 : i32, i32
  }
  func.func @transform_3(%arg0: i32, %arg1: i32) -> (i32, i32) {
    %c0_i32 = arith.constant 0 : i32
    %c0_i32_0 = arith.constant 0 : i32
    %c0_i32_1 = arith.constant 0 : i32
    return %c0_i32, %c0_i32_0 : i32, i32
  }
  func.func @transform_4(%arg0: i32, %arg1: i32) -> (i32, i32, i32) {
    %c0_i32 = arith.constant 0 : i32
    %c0_i32_0 = arith.constant 0 : i32
    return %arg0, %arg1, %c0_i32 : i32, i32, i32
  }
}

module attributes {stable_mosaic.version = 11 : i64} {
  func.func @_conv_mm_pos_kernel(%arg0: i32, %arg1: i32, %arg2: memref<1x4x384xbf16, #tpu.memory_space<vmem>>, %arg3: memref<384x32xbf16, #tpu.memory_space<vmem>>, %arg4: memref<1x32xf32, #tpu.memory_space<vmem>>, %arg5: memref<1x32xf32, #tpu.memory_space<vmem>>, %arg6: memref<1x4x32xf32, #tpu.memory_space<vmem>>, %arg7: memref<1x4x32xbf16, #tpu.memory_space<vmem>>) attributes {dimension_semantics = [#tpu.dimension_semantics<parallel>, #tpu.dimension_semantics<parallel>], iteration_bounds = array<i64: 2, 1>, scalar_prefetch = 0 : i64, scratch_operands = 0 : i64, tpu.core_type = #tpu.core_type<tc>, window_params = [{transform_indices = @transform_0, window_bounds = array<i64: 1, 4, 384>}, {pipeline_mode = #tpu.pipeline_mode<synchronous>, transform_indices = @transform_1, window_bounds = array<i64: 384, 32>}, {pipeline_mode = #tpu.pipeline_mode<synchronous>, transform_indices = @transform_2, window_bounds = array<i64: 1, 32>}, {pipeline_mode = #tpu.pipeline_mode<synchronous>, transform_indices = @transform_3, window_bounds = array<i64: 1, 32>}, {transform_indices = @transform_4, window_bounds = array<i64: 1, 4, 32>}, {transform_indices = @transform_5, window_bounds = array<i64: 1, 4, 32>}]} {
    %c0 = arith.constant 0 : index
    %c0_0 = arith.constant 0 : index
    %c0_1 = arith.constant 0 : index
    %0 = vector.load %arg2[%c0, %c0_0, %c0_1] : memref<1x4x384xbf16, #tpu.memory_space<vmem>>, vector<1x4x384xbf16>
    %1 = vector.shape_cast %0 : vector<1x4x384xbf16> to vector<4x384xbf16>
    %c0_2 = arith.constant 0 : index
    %c0_3 = arith.constant 0 : index
    %2 = vector.load %arg3[%c0_2, %c0_3] : memref<384x32xbf16, #tpu.memory_space<vmem>>, vector<384x32xbf16>
    %cst = arith.constant dense<0.000000e+00> : vector<4x32xf32>
    %3 = tpu.matmul %1, %2, %cst {dimension_numbers = #tpu.dot_dimension_numbers<[1], [0], [0], [1], [0, 0, 1, 1], [], []>} : vector<4x384xbf16>, vector<384x32xbf16>, vector<4x32xf32> -> vector<4x32xf32>
    %c0_4 = arith.constant 0 : index
    %c0_5 = arith.constant 0 : index
    %4 = vector.load %arg4[%c0_4, %c0_5] : memref<1x32xf32, #tpu.memory_space<vmem>>, vector<1x32xf32>
    %5 = vector.broadcast %4 : vector<1x32xf32> to vector<4x32xf32>
    %6 = arith.mulf %3, %5 : vector<4x32xf32>
    %c0_6 = arith.constant 0 : index
    %c0_7 = arith.constant 0 : index
    %7 = vector.load %arg5[%c0_6, %c0_7] : memref<1x32xf32, #tpu.memory_space<vmem>>, vector<1x32xf32>
    %8 = vector.broadcast %7 : vector<1x32xf32> to vector<4x32xf32>
    %9 = arith.addf %6, %8 : vector<4x32xf32>
    %c0_8 = arith.constant 0 : index
    %c0_9 = arith.constant 0 : index
    %c0_10 = arith.constant 0 : index
    %10 = vector.load %arg6[%c0_8, %c0_9, %c0_10] : memref<1x4x32xf32, #tpu.memory_space<vmem>>, vector<1x4x32xf32>
    %11 = vector.shape_cast %10 : vector<1x4x32xf32> to vector<4x32xf32>
    %12 = arith.addf %9, %11 : vector<4x32xf32>
    %13 = arith.truncf %12 : vector<4x32xf32> to vector<4x32xbf16>
    %c0_11 = arith.constant 0 : index
    %c0_12 = arith.constant 0 : index
    %c0_13 = arith.constant 0 : index
    %14 = vector.load %arg7[%c0_11, %c0_12, %c0_13] : memref<1x4x32xbf16, #tpu.memory_space<vmem>>, vector<1x4x32xbf16>
    %15 = vector.shape_cast %14 : vector<1x4x32xbf16> to vector<4x32xbf16>
    %16 = vector.shape_cast %13 : vector<4x32xbf16> to vector<1x4x32xbf16>
    tpu.vector_store %arg7[%c0_11, %c0_12, %c0_13], %16 {strides = array<i32>} : memref<1x4x32xbf16, #tpu.memory_space<vmem>>, vector<1x4x32xbf16>,
    return
  }
  func.func @transform_0(%arg0: i32, %arg1: i32) -> (i32, i32, i32) {
    %c0_i32 = arith.constant 0 : i32
    %c0_i32_0 = arith.constant 0 : i32
    return %arg0, %arg1, %c0_i32 : i32, i32, i32
  }
  func.func @transform_1(%arg0: i32, %arg1: i32) -> (i32, i32) {
    %c0_i32 = arith.constant 0 : i32
    %c0_i32_0 = arith.constant 0 : i32
    %c0_i32_1 = arith.constant 0 : i32
    return %c0_i32, %c0_i32_0 : i32, i32
  }
  func.func @transform_2(%arg0: i32, %arg1: i32) -> (i32, i32) {
    %c0_i32 = arith.constant 0 : i32
    %c0_i32_0 = arith.constant 0 : i32
    %c0_i32_1 = arith.constant 0 : i32
    return %c0_i32, %c0_i32_0 : i32, i32
  }
  func.func @transform_3(%arg0: i32, %arg1: i32) -> (i32, i32) {
    %c0_i32 = arith.constant 0 : i32
    %c0_i32_0 = arith.constant 0 : i32
    %c0_i32_1 = arith.constant 0 : i32
    return %c0_i32, %c0_i32_0 : i32, i32
  }
  func.func @transform_4(%arg0: i32, %arg1: i32) -> (i32, i32, i32) {
    %c0_i32 = arith.constant 0 : i32
    %c0_i32_0 = arith.constant 0 : i32
    %c0_i32_1 = arith.constant 0 : i32
    return %c0_i32, %arg1, %c0_i32_0 : i32, i32, i32
  }
  func.func @transform_5(%arg0: i32, %arg1: i32) -> (i32, i32, i32) {
    %c0_i32 = arith.constant 0 : i32
    %c0_i32_0 = arith.constant 0 : i32
    return %arg0, %arg1, %c0_i32 : i32, i32, i32
  }
}

module attributes {stable_mosaic.version = 11 : i64} {
  func.func @_ffn_kernel(%arg0: i32, %arg1: i32, %arg2: memref<1x4x32xbf16, #tpu.memory_space<vmem>>, %arg3: memref<32x128xbf16, #tpu.memory_space<vmem>>, %arg4: memref<1x128xf32, #tpu.memory_space<vmem>>, %arg5: memref<1x128xf32, #tpu.memory_space<vmem>>, %arg6: memref<128x32xbf16, #tpu.memory_space<vmem>>, %arg7: memref<1x32xf32, #tpu.memory_space<vmem>>, %arg8: memref<1x32xf32, #tpu.memory_space<vmem>>, %arg9: memref<1x4x32xbf16, #tpu.memory_space<vmem>>) attributes {dimension_semantics = [#tpu.dimension_semantics<parallel>, #tpu.dimension_semantics<parallel>], iteration_bounds = array<i64: 2, 1>, scalar_prefetch = 0 : i64, scratch_operands = 0 : i64, tpu.core_type = #tpu.core_type<tc>, window_params = [{transform_indices = @transform_0, window_bounds = array<i64: 1, 4, 32>}, {pipeline_mode = #tpu.pipeline_mode<synchronous>, transform_indices = @transform_1, window_bounds = array<i64: 32, 128>}, {pipeline_mode = #tpu.pipeline_mode<synchronous>, transform_indices = @transform_2, window_bounds = array<i64: 1, 128>}, {pipeline_mode = #tpu.pipeline_mode<synchronous>, transform_indices = @transform_3, window_bounds = array<i64: 1, 128>}, {pipeline_mode = #tpu.pipeline_mode<synchronous>, transform_indices = @transform_4, window_bounds = array<i64: 128, 32>}, {pipeline_mode = #tpu.pipeline_mode<synchronous>, transform_indices = @transform_5, window_bounds = array<i64: 1, 32>}, {pipeline_mode = #tpu.pipeline_mode<synchronous>, transform_indices = @transform_6, window_bounds = array<i64: 1, 32>}, {transform_indices = @transform_7, window_bounds = array<i64: 1, 4, 32>}]} {
    %c0 = arith.constant 0 : index
    %c0_0 = arith.constant 0 : index
    %c0_1 = arith.constant 0 : index
    %0 = vector.load %arg2[%c0, %c0_0, %c0_1] : memref<1x4x32xbf16, #tpu.memory_space<vmem>>, vector<1x4x32xbf16>
    %1 = vector.shape_cast %0 : vector<1x4x32xbf16> to vector<4x32xbf16>
    %c0_2 = arith.constant 0 : index
    %c0_3 = arith.constant 0 : index
    %2 = vector.load %arg3[%c0_2, %c0_3] : memref<32x128xbf16, #tpu.memory_space<vmem>>, vector<32x128xbf16>
    %cst = arith.constant dense<0.000000e+00> : vector<4x128xf32>
    %3 = tpu.matmul %1, %2, %cst {dimension_numbers = #tpu.dot_dimension_numbers<[1], [0], [0], [1], [0, 0, 1, 1], [], []>} : vector<4x32xbf16>, vector<32x128xbf16>, vector<4x128xf32> -> vector<4x128xf32>
    %c0_4 = arith.constant 0 : index
    %c0_5 = arith.constant 0 : index
    %4 = vector.load %arg4[%c0_4, %c0_5] : memref<1x128xf32, #tpu.memory_space<vmem>>, vector<1x128xf32>
    %5 = vector.broadcast %4 : vector<1x128xf32> to vector<4x128xf32>
    %6 = arith.mulf %3, %5 : vector<4x128xf32>
    %c0_6 = arith.constant 0 : index
    %c0_7 = arith.constant 0 : index
    %7 = vector.load %arg5[%c0_6, %c0_7] : memref<1x128xf32, #tpu.memory_space<vmem>>, vector<1x128xf32>
    %8 = vector.broadcast %7 : vector<1x128xf32> to vector<4x128xf32>
    %9 = arith.addf %6, %8 : vector<4x128xf32>
    %cst_8 = arith.constant 0.000000e+00 : f32
    %10 = vector.broadcast %cst_8 : f32 to vector<4x128xf32>
    %11 = arith.maximumf %9, %10 : vector<4x128xf32>
    %12 = arith.truncf %11 : vector<4x128xf32> to vector<4x128xbf16>
    %c0_9 = arith.constant 0 : index
    %c0_10 = arith.constant 0 : index
    %13 = vector.load %arg6[%c0_9, %c0_10] : memref<128x32xbf16, #tpu.memory_space<vmem>>, vector<128x32xbf16>
    %cst_11 = arith.constant dense<0.000000e+00> : vector<4x32xf32>
    %14 = tpu.matmul %12, %13, %cst_11 {dimension_numbers = #tpu.dot_dimension_numbers<[1], [0], [0], [1], [0, 0, 1, 1], [], []>} : vector<4x128xbf16>, vector<128x32xbf16>, vector<4x32xf32> -> vector<4x32xf32>
    %c0_12 = arith.constant 0 : index
    %c0_13 = arith.constant 0 : index
    %15 = vector.load %arg7[%c0_12, %c0_13] : memref<1x32xf32, #tpu.memory_space<vmem>>, vector<1x32xf32>
    %16 = vector.broadcast %15 : vector<1x32xf32> to vector<4x32xf32>
    %17 = arith.mulf %14, %16 : vector<4x32xf32>
    %c0_14 = arith.constant 0 : index
    %c0_15 = arith.constant 0 : index
    %18 = vector.load %arg8[%c0_14, %c0_15] : memref<1x32xf32, #tpu.memory_space<vmem>>, vector<1x32xf32>
    %19 = vector.broadcast %18 : vector<1x32xf32> to vector<4x32xf32>
    %20 = arith.addf %17, %19 : vector<4x32xf32>
    %21 = arith.extf %1 : vector<4x32xbf16> to vector<4x32xf32>
    %22 = arith.addf %20, %21 : vector<4x32xf32>
    %23 = arith.truncf %22 : vector<4x32xf32> to vector<4x32xbf16>
    %c0_16 = arith.constant 0 : index
    %c0_17 = arith.constant 0 : index
    %c0_18 = arith.constant 0 : index
    %24 = vector.load %arg9[%c0_16, %c0_17, %c0_18] : memref<1x4x32xbf16, #tpu.memory_space<vmem>>, vector<1x4x32xbf16>
    %25 = vector.shape_cast %24 : vector<1x4x32xbf16> to vector<4x32xbf16>
    %26 = vector.shape_cast %23 : vector<4x32xbf16> to vector<1x4x32xbf16>
    tpu.vector_store %arg9[%c0_16, %c0_17, %c0_18], %26 {strides = array<i32>} : memref<1x4x32xbf16, #tpu.memory_space<vmem>>, vector<1x4x32xbf16>,
    return
  }
  func.func @transform_0(%arg0: i32, %arg1: i32) -> (i32, i32, i32) {
    %c0_i32 = arith.constant 0 : i32
    %c0_i32_0 = arith.constant 0 : i32
    return %arg0, %arg1, %c0_i32 : i32, i32, i32
  }
  func.func @transform_1(%arg0: i32, %arg1: i32) -> (i32, i32) {
    %c0_i32 = arith.constant 0 : i32
    %c0_i32_0 = arith.constant 0 : i32
    %c0_i32_1 = arith.constant 0 : i32
    return %c0_i32, %c0_i32_0 : i32, i32
  }
  func.func @transform_2(%arg0: i32, %arg1: i32) -> (i32, i32) {
    %c0_i32 = arith.constant 0 : i32
    %c0_i32_0 = arith.constant 0 : i32
    %c0_i32_1 = arith.constant 0 : i32
    return %c0_i32, %c0_i32_0 : i32, i32
  }
  func.func @transform_3(%arg0: i32, %arg1: i32) -> (i32, i32) {
    %c0_i32 = arith.constant 0 : i32
    %c0_i32_0 = arith.constant 0 : i32
    %c0_i32_1 = arith.constant 0 : i32
    return %c0_i32, %c0_i32_0 : i32, i32
  }
  func.func @transform_4(%arg0: i32, %arg1: i32) -> (i32, i32) {
    %c0_i32 = arith.constant 0 : i32
    %c0_i32_0 = arith.constant 0 : i32
    %c0_i32_1 = arith.constant 0 : i32
    return %c0_i32, %c0_i32_0 : i32, i32
  }
  func.func @transform_5(%arg0: i32, %arg1: i32) -> (i32, i32) {
    %c0_i32 = arith.constant 0 : i32
    %c0_i32_0 = arith.constant 0 : i32
    %c0_i32_1 = arith.constant 0 : i32
    return %c0_i32, %c0_i32_0 : i32, i32
  }
  func.func @transform_6(%arg0: i32, %arg1: i32) -> (i32, i32) {
    %c0_i32 = arith.constant 0 : i32
    %c0_i32_0 = arith.constant 0 : i32
    %c0_i32_1 = arith.constant 0 : i32
    return %c0_i32, %c0_i32_0 : i32, i32
  }
  func.func @transform_7(%arg0: i32, %arg1: i32) -> (i32, i32, i32) {
    %c0_i32 = arith.constant 0 : i32
    %c0_i32_0 = arith.constant 0 : i32
    return %arg0, %arg1, %c0_i32 : i32, i32, i32
  }
}

module attributes {stable_mosaic.version = 11 : i64} {
  func.func @_ffn_gap_kernel(%arg0: i32, %arg1: i32, %arg2: memref<1x4x32xbf16, #tpu.memory_space<vmem>>, %arg3: memref<32x128xbf16, #tpu.memory_space<vmem>>, %arg4: memref<1x128xf32, #tpu.memory_space<vmem>>, %arg5: memref<1x128xf32, #tpu.memory_space<vmem>>, %arg6: memref<128x32xbf16, #tpu.memory_space<vmem>>, %arg7: memref<1x32xf32, #tpu.memory_space<vmem>>, %arg8: memref<1x32xf32, #tpu.memory_space<vmem>>, %arg9: memref<1x1x32xf32, #tpu.memory_space<vmem>>, %arg10: memref<1x32xf32, #tpu.memory_space<vmem>>) attributes {dimension_semantics = [#tpu.dimension_semantics<parallel>, #tpu.dimension_semantics<arbitrary>], iteration_bounds = array<i64: 2, 1>, scalar_prefetch = 0 : i64, scratch_operands = 1 : i64, tpu.core_type = #tpu.core_type<tc>, window_params = [{transform_indices = @transform_0, window_bounds = array<i64: 1, 4, 32>}, {pipeline_mode = #tpu.pipeline_mode<synchronous>, transform_indices = @transform_1, window_bounds = array<i64: 32, 128>}, {pipeline_mode = #tpu.pipeline_mode<synchronous>, transform_indices = @transform_2, window_bounds = array<i64: 1, 128>}, {pipeline_mode = #tpu.pipeline_mode<synchronous>, transform_indices = @transform_3, window_bounds = array<i64: 1, 128>}, {pipeline_mode = #tpu.pipeline_mode<synchronous>, transform_indices = @transform_4, window_bounds = array<i64: 128, 32>}, {pipeline_mode = #tpu.pipeline_mode<synchronous>, transform_indices = @transform_5, window_bounds = array<i64: 1, 32>}, {pipeline_mode = #tpu.pipeline_mode<synchronous>, transform_indices = @transform_6, window_bounds = array<i64: 1, 32>}, {transform_indices = @transform_7, window_bounds = array<i64: 1, 1, 32>}]} {
    %c0_i32 = arith.constant 0 : i32
    %0 = arith.cmpi eq, %arg1, %c0_i32 : i32
    %1 = arith.extui %0 : i1 to i32
    %c0_i32_0 = arith.constant 0 : i32
    %2 = arith.cmpi ne, %1, %c0_i32_0 : i32
    scf.if %2 {
      %cst_24 = arith.constant 0.000000e+00 : f32
      %34 = vector.broadcast %cst_24 : f32 to vector<1x32xf32>
      %c0_25 = arith.constant 0 : index
      %c0_26 = arith.constant 0 : index
      %35 = vector.load %arg10[%c0_25, %c0_26] : memref<1x32xf32, #tpu.memory_space<vmem>>, vector<1x32xf32>
      tpu.vector_store %arg10[%c0_25, %c0_26], %34 {strides = array<i32>} : memref<1x32xf32, #tpu.memory_space<vmem>>, vector<1x32xf32>,
    } else {
    }
    %c0 = arith.constant 0 : index
    %c0_1 = arith.constant 0 : index
    %c0_2 = arith.constant 0 : index
    %3 = vector.load %arg2[%c0, %c0_1, %c0_2] : memref<1x4x32xbf16, #tpu.memory_space<vmem>>, vector<1x4x32xbf16>
    %4 = vector.shape_cast %3 : vector<1x4x32xbf16> to vector<4x32xbf16>
    %c0_3 = arith.constant 0 : index
    %c0_4 = arith.constant 0 : index
    %5 = vector.load %arg3[%c0_3, %c0_4] : memref<32x128xbf16, #tpu.memory_space<vmem>>, vector<32x128xbf16>
    %cst = arith.constant dense<0.000000e+00> : vector<4x128xf32>
    %6 = tpu.matmul %4, %5, %cst {dimension_numbers = #tpu.dot_dimension_numbers<[1], [0], [0], [1], [0, 0, 1, 1], [], []>} : vector<4x32xbf16>, vector<32x128xbf16>, vector<4x128xf32> -> vector<4x128xf32>
    %c0_5 = arith.constant 0 : index
    %c0_6 = arith.constant 0 : index
    %7 = vector.load %arg4[%c0_5, %c0_6] : memref<1x128xf32, #tpu.memory_space<vmem>>, vector<1x128xf32>
    %8 = vector.broadcast %7 : vector<1x128xf32> to vector<4x128xf32>
    %9 = arith.mulf %6, %8 : vector<4x128xf32>
    %c0_7 = arith.constant 0 : index
    %c0_8 = arith.constant 0 : index
    %10 = vector.load %arg5[%c0_7, %c0_8] : memref<1x128xf32, #tpu.memory_space<vmem>>, vector<1x128xf32>
    %11 = vector.broadcast %10 : vector<1x128xf32> to vector<4x128xf32>
    %12 = arith.addf %9, %11 : vector<4x128xf32>
    %cst_9 = arith.constant 0.000000e+00 : f32
    %13 = vector.broadcast %cst_9 : f32 to vector<4x128xf32>
    %14 = arith.maximumf %12, %13 : vector<4x128xf32>
    %15 = arith.truncf %14 : vector<4x128xf32> to vector<4x128xbf16>
    %c0_10 = arith.constant 0 : index
    %c0_11 = arith.constant 0 : index
    %16 = vector.load %arg6[%c0_10, %c0_11] : memref<128x32xbf16, #tpu.memory_space<vmem>>, vector<128x32xbf16>
    %cst_12 = arith.constant dense<0.000000e+00> : vector<4x32xf32>
    %17 = tpu.matmul %15, %16, %cst_12 {dimension_numbers = #tpu.dot_dimension_numbers<[1], [0], [0], [1], [0, 0, 1, 1], [], []>} : vector<4x128xbf16>, vector<128x32xbf16>, vector<4x32xf32> -> vector<4x32xf32>
    %c0_13 = arith.constant 0 : index
    %c0_14 = arith.constant 0 : index
    %18 = vector.load %arg7[%c0_13, %c0_14] : memref<1x32xf32, #tpu.memory_space<vmem>>, vector<1x32xf32>
    %19 = vector.broadcast %18 : vector<1x32xf32> to vector<4x32xf32>
    %20 = arith.mulf %17, %19 : vector<4x32xf32>
    %c0_15 = arith.constant 0 : index
    %c0_16 = arith.constant 0 : index
    %21 = vector.load %arg8[%c0_15, %c0_16] : memref<1x32xf32, #tpu.memory_space<vmem>>, vector<1x32xf32>
    %22 = vector.broadcast %21 : vector<1x32xf32> to vector<4x32xf32>
    %23 = arith.addf %20, %22 : vector<4x32xf32>
    %24 = arith.extf %4 : vector<4x32xbf16> to vector<4x32xf32>
    %25 = arith.addf %23, %24 : vector<4x32xf32>
    %c0_17 = arith.constant 0 : index
    %c0_18 = arith.constant 0 : index
    %26 = vector.load %arg10[%c0_17, %c0_18] : memref<1x32xf32, #tpu.memory_space<vmem>>, vector<1x32xf32>
    %cst_19 = arith.constant dense<0.000000e+00> : vector<32xf32>
    %27 = vector.multi_reduction <add>, %25, %cst_19 [0] : vector<4x32xf32> to vector<32xf32>
    %28 = vector.shape_cast %27 : vector<32xf32> to vector<1x32xf32>
    %29 = arith.addf %26, %28 : vector<1x32xf32>
    %c0_20 = arith.constant 0 : index
    %c0_21 = arith.constant 0 : index
    %30 = vector.load %arg10[%c0_20, %c0_21] : memref<1x32xf32, #tpu.memory_space<vmem>>, vector<1x32xf32>
    tpu.vector_store %arg10[%c0_20, %c0_21], %29 {strides = array<i32>} : memref<1x32xf32, #tpu.memory_space<vmem>>, vector<1x32xf32>,
    %c0_i32_22 = arith.constant 0 : i32
    %31 = arith.cmpi eq, %arg1, %c0_i32_22 : i32
    %32 = arith.extui %31 : i1 to i32
    %c0_i32_23 = arith.constant 0 : i32
    %33 = arith.cmpi ne, %32, %c0_i32_23 : i32
    scf.if %33 {
      %c0_24 = arith.constant 0 : index
      %c0_25 = arith.constant 0 : index
      %34 = vector.load %arg10[%c0_24, %c0_25] : memref<1x32xf32, #tpu.memory_space<vmem>>, vector<1x32xf32>
      %cst_26 = arith.constant 2.500000e-01 : f32
      %35 = vector.broadcast %cst_26 : f32 to vector<1x32xf32>
      %36 = arith.mulf %34, %35 : vector<1x32xf32>
      %c0_27 = arith.constant 0 : index
      %c0_28 = arith.constant 0 : index
      %c0_29 = arith.constant 0 : index
      %37 = vector.load %arg9[%c0_27, %c0_28, %c0_29] : memref<1x1x32xf32, #tpu.memory_space<vmem>>, vector<1x1x32xf32>
      %38 = vector.shape_cast %37 : vector<1x1x32xf32> to vector<1x32xf32>
      %39 = vector.shape_cast %36 : vector<1x32xf32> to vector<1x1x32xf32>
      tpu.vector_store %arg9[%c0_27, %c0_28, %c0_29], %39 {strides = array<i32>} : memref<1x1x32xf32, #tpu.memory_space<vmem>>, vector<1x1x32xf32>,
    } else {
    }
    return
  }
  func.func @transform_0(%arg0: i32, %arg1: i32) -> (i32, i32, i32) {
    %c0_i32 = arith.constant 0 : i32
    %c0_i32_0 = arith.constant 0 : i32
    return %arg0, %arg1, %c0_i32 : i32, i32, i32
  }
  func.func @transform_1(%arg0: i32, %arg1: i32) -> (i32, i32) {
    %c0_i32 = arith.constant 0 : i32
    %c0_i32_0 = arith.constant 0 : i32
    %c0_i32_1 = arith.constant 0 : i32
    return %c0_i32, %c0_i32_0 : i32, i32
  }
  func.func @transform_2(%arg0: i32, %arg1: i32) -> (i32, i32) {
    %c0_i32 = arith.constant 0 : i32
    %c0_i32_0 = arith.constant 0 : i32
    %c0_i32_1 = arith.constant 0 : i32
    return %c0_i32, %c0_i32_0 : i32, i32
  }
  func.func @transform_3(%arg0: i32, %arg1: i32) -> (i32, i32) {
    %c0_i32 = arith.constant 0 : i32
    %c0_i32_0 = arith.constant 0 : i32
    %c0_i32_1 = arith.constant 0 : i32
    return %c0_i32, %c0_i32_0 : i32, i32
  }
  func.func @transform_4(%arg0: i32, %arg1: i32) -> (i32, i32) {
    %c0_i32 = arith.constant 0 : i32
    %c0_i32_0 = arith.constant 0 : i32
    %c0_i32_1 = arith.constant 0 : i32
    return %c0_i32, %c0_i32_0 : i32, i32
  }
  func.func @transform_5(%arg0: i32, %arg1: i32) -> (i32, i32) {
    %c0_i32 = arith.constant 0 : i32
    %c0_i32_0 = arith.constant 0 : i32
    %c0_i32_1 = arith.constant 0 : i32
    return %c0_i32, %c0_i32_0 : i32, i32
  }
  func.func @transform_6(%arg0: i32, %arg1: i32) -> (i32, i32) {
    %c0_i32 = arith.constant 0 : i32
    %c0_i32_0 = arith.constant 0 : i32
    %c0_i32_1 = arith.constant 0 : i32
    return %c0_i32, %c0_i32_0 : i32, i32
  }
  func.func @transform_7(%arg0: i32, %arg1: i32) -> (i32, i32, i32) {
    %c0_i32 = arith.constant 0 : i32
    %c0_i32_0 = arith.constant 0 : i32
    %c0_i32_1 = arith.constant 0 : i32
    return %arg0, %c0_i32, %c0_i32_0 : i32, i32, i32
  }
}

module attributes {stable_mosaic.version = 11 : i64} {
  func.func @_head_kernel(%arg0: i32, %arg1: memref<8x32xbf16, #tpu.memory_space<vmem>>, %arg2: memref<32x1024xbf16, #tpu.memory_space<vmem>>, %arg3: memref<1x1024xf32, #tpu.memory_space<vmem>>, %arg4: memref<1x1024xf32, #tpu.memory_space<vmem>>, %arg5: memref<1024x128xbf16, #tpu.memory_space<vmem>>, %arg6: memref<1x128xf32, #tpu.memory_space<vmem>>, %arg7: memref<8x128xf32, #tpu.memory_space<vmem>>) attributes {dimension_semantics = [#tpu.dimension_semantics<arbitrary>], iteration_bounds = array<i64: 1>, scalar_prefetch = 0 : i64, scratch_operands = 0 : i64, tpu.core_type = #tpu.core_type<tc>, window_params = [{pipeline_mode = #tpu.pipeline_mode<synchronous>, transform_indices = @transform_0, window_bounds = array<i64: 8, 32>}, {pipeline_mode = #tpu.pipeline_mode<synchronous>, transform_indices = @transform_1, window_bounds = array<i64: 32, 1024>}, {pipeline_mode = #tpu.pipeline_mode<synchronous>, transform_indices = @transform_2, window_bounds = array<i64: 1, 1024>}, {pipeline_mode = #tpu.pipeline_mode<synchronous>, transform_indices = @transform_3, window_bounds = array<i64: 1, 1024>}, {pipeline_mode = #tpu.pipeline_mode<synchronous>, transform_indices = @transform_4, window_bounds = array<i64: 1024, 128>}, {pipeline_mode = #tpu.pipeline_mode<synchronous>, transform_indices = @transform_5, window_bounds = array<i64: 1, 128>}, {pipeline_mode = #tpu.pipeline_mode<synchronous>, transform_indices = @transform_6, window_bounds = array<i64: 8, 128>}]} {
    %c0 = arith.constant 0 : index
    %c0_0 = arith.constant 0 : index
    %0 = vector.load %arg1[%c0, %c0_0] : memref<8x32xbf16, #tpu.memory_space<vmem>>, vector<8x32xbf16>
    %c0_1 = arith.constant 0 : index
    %c0_2 = arith.constant 0 : index
    %1 = vector.load %arg2[%c0_1, %c0_2] : memref<32x1024xbf16, #tpu.memory_space<vmem>>, vector<32x1024xbf16>
    %cst = arith.constant dense<0.000000e+00> : vector<8x1024xf32>
    %2 = tpu.matmul %0, %1, %cst {dimension_numbers = #tpu.dot_dimension_numbers<[1], [0], [0], [1], [0, 0, 1, 1], [], []>} : vector<8x32xbf16>, vector<32x1024xbf16>, vector<8x1024xf32> -> vector<8x1024xf32>
    %c0_3 = arith.constant 0 : index
    %c0_4 = arith.constant 0 : index
    %3 = vector.load %arg3[%c0_3, %c0_4] : memref<1x1024xf32, #tpu.memory_space<vmem>>, vector<1x1024xf32>
    %4 = vector.broadcast %3 : vector<1x1024xf32> to vector<8x1024xf32>
    %5 = arith.mulf %2, %4 : vector<8x1024xf32>
    %c0_5 = arith.constant 0 : index
    %c0_6 = arith.constant 0 : index
    %6 = vector.load %arg4[%c0_5, %c0_6] : memref<1x1024xf32, #tpu.memory_space<vmem>>, vector<1x1024xf32>
    %7 = vector.broadcast %6 : vector<1x1024xf32> to vector<8x1024xf32>
    %8 = arith.addf %5, %7 : vector<8x1024xf32>
    %cst_7 = arith.constant 0.000000e+00 : f32
    %9 = vector.broadcast %cst_7 : f32 to vector<8x1024xf32>
    %10 = arith.maximumf %8, %9 : vector<8x1024xf32>
    %11 = arith.truncf %10 : vector<8x1024xf32> to vector<8x1024xbf16>
    %c0_8 = arith.constant 0 : index
    %c0_9 = arith.constant 0 : index
    %12 = vector.load %arg5[%c0_8, %c0_9] : memref<1024x128xbf16, #tpu.memory_space<vmem>>, vector<1024x128xbf16>
    %cst_10 = arith.constant dense<0.000000e+00> : vector<8x128xf32>
    %13 = tpu.matmul %11, %12, %cst_10 {dimension_numbers = #tpu.dot_dimension_numbers<[1], [0], [0], [1], [0, 0, 1, 1], [], []>} : vector<8x1024xbf16>, vector<1024x128xbf16>, vector<8x128xf32> -> vector<8x128xf32>
    %c0_11 = arith.constant 0 : index
    %c0_12 = arith.constant 0 : index
    %14 = vector.load %arg6[%c0_11, %c0_12] : memref<1x128xf32, #tpu.memory_space<vmem>>, vector<1x128xf32>
    %15 = vector.broadcast %14 : vector<1x128xf32> to vector<8x128xf32>
    %16 = arith.addf %13, %15 : vector<8x128xf32>
    %c0_13 = arith.constant 0 : index
    %c0_14 = arith.constant 0 : index
    %17 = vector.load %arg7[%c0_13, %c0_14] : memref<8x128xf32, #tpu.memory_space<vmem>>, vector<8x128xf32>
    tpu.vector_store %arg7[%c0_13, %c0_14], %16 {strides = array<i32>} : memref<8x128xf32, #tpu.memory_space<vmem>>, vector<8x128xf32>,
    return
  }
  func.func @transform_0(%arg0: i32) -> (i32, i32) {
    %c0_i32 = arith.constant 0 : i32
    %c0_i32_0 = arith.constant 0 : i32
    %c0_i32_1 = arith.constant 0 : i32
    return %c0_i32, %c0_i32_0 : i32, i32
  }
  func.func @transform_1(%arg0: i32) -> (i32, i32) {
    %c0_i32 = arith.constant 0 : i32
    %c0_i32_0 = arith.constant 0 : i32
    %c0_i32_1 = arith.constant 0 : i32
    return %c0_i32, %c0_i32_0 : i32, i32
  }
  func.func @transform_2(%arg0: i32) -> (i32, i32) {
    %c0_i32 = arith.constant 0 : i32
    %c0_i32_0 = arith.constant 0 : i32
    %c0_i32_1 = arith.constant 0 : i32
    return %c0_i32, %c0_i32_0 : i32, i32
  }
  func.func @transform_3(%arg0: i32) -> (i32, i32) {
    %c0_i32 = arith.constant 0 : i32
    %c0_i32_0 = arith.constant 0 : i32
    %c0_i32_1 = arith.constant 0 : i32
    return %c0_i32, %c0_i32_0 : i32, i32
  }
  func.func @transform_4(%arg0: i32) -> (i32, i32) {
    %c0_i32 = arith.constant 0 : i32
    %c0_i32_0 = arith.constant 0 : i32
    %c0_i32_1 = arith.constant 0 : i32
    return %c0_i32, %c0_i32_0 : i32, i32
  }
  func.func @transform_5(%arg0: i32) -> (i32, i32) {
    %c0_i32 = arith.constant 0 : i32
    %c0_i32_0 = arith.constant 0 : i32
    %c0_i32_1 = arith.constant 0 : i32
    return %c0_i32, %c0_i32_0 : i32, i32
  }
  func.func @transform_6(%arg0: i32) -> (i32, i32) {
    %c0_i32 = arith.constant 0 : i32
    %c0_i32_0 = arith.constant 0 : i32
    %c0_i32_1 = arith.constant 0 : i32
    return %c0_i32, %c0_i32_0 : i32, i32
  }
}

</mosaic_0001>

<bundles_post_ra>
// kernel: _lambda_.8
= control target key start
LH: loop header
LB: loop body
LE: loop exit
PB: predicated region body
PF: predicated region fallthrough
CT: control target
= control target key end

     0   :  { %s1237_s15 = smov 0   ;;  %s1239_s16 = smov 0   ;;  %s1459_s0 = inlined_call_operand.vmem [shape: bf16[2,256,128], index: 0, kind: input, shape index: {}]   ;;  %s1460_s1 = inlined_call_operand.vmem [shape: bf16[128,4], index: 1, kind: input, shape index: {}]   ;;  %s1461_s2 = inlined_call_operand.vmem [shape: f32[1,4], index: 2, kind: input, shape index: {}]   ;;  %s1462_s3 = inlined_call_operand.vmem [shape: f32[1,4], index: 3, kind: input, shape index: {}]   ;;  %s1463_s4 = inlined_call_operand.vmem [shape: bf16[2,256,4], index: 4, kind: output, shape index: {}]  }
   0x1   :  { %s1241_s17 = smov 0  }
   0x2 LB: > { %s26_s18 = sadd.s32 1, %s1206_s16  ;;  %p953_p0 = scmp.ge.s32.totalorder %s1210_s17, 1  ;;  %s1210_s17 = sphi %s1241_s17, %s14_s17   ;;  %s1206_s16 = sphi %s1239_s16, %s1465_s16   ;;  %s1202_s15 = sphi %s1237_s15, %s1464_s15  }
   0x3   : > { %p28_p1 = scmp.ge.s32.totalorder %s26_s18, 2  ;;  %p183_p2 = scmp.lt.s32.totalorder %s1210_s17, 3 }
   0x5   : > { %s1467_s18 = smov (%p28_p1, %s26_s18), 0  ;;  %p184_p3 = pnand %p953_p0, %p183_p2 }
   0x6   : > { %v1164_v0 = vld [vmem:[%s1460_s1] sm:$0xff] (!%p184_p3)   ;;  %p218_p4 = scmp.lt.s32.totalorder (!%p184_p3), %s1202_s15, 1  ;;  %v1165_v1 = vld [vmem:[%s1460_s1 + $0x8] sm:$0xff] (!%p184_p3)   ;;  %v1166_v2 = vld [vmem:[%s1460_s1 + $0x10] sm:$0xff] (!%p184_p3)   ;;  %vm829_vm0 = vcmask (!%p184_p3), 27648  }
   0x7   : > { %187 = sbr.rel (%p184_p3) target bundleno = 290 (0x122), region = 36  ;;  %1076 = vmatprep.subr.bf16.mxu0 (!%p184_p3), %v1164_v0  ;;  %1124 = vmatprep.subr.bf16.mxu1 (!%p184_p3), %v1164_v0  ;;  %v1167_v3 = vld [vmem:[%s1460_s1 + $0x18] sm:$0xff] (!%p184_p3)   ;;  %v1168_v6 = vld [vmem:[%s1460_s1 + $0x20] sm:$0xff] (!%p184_p3)   ;;  %v1169_v7 = vld [vmem:[%s1460_s1 + $0x28] sm:$0xff] (!%p184_p3)  }
   0x8   : > { %1077 = vmatpush3.bf16.msra.mxu0 (!%p184_p3), %v1164_v0  ;;  %1132 = vmatpush3.bf16.msra.mxu1 (!%p184_p3), %v1164_v0  ;;  %v1170_v8 = vld [vmem:[%s1460_s1 + $0x30] sm:$0xff] (!%p184_p3)   ;;  %v1171_v9 = vld [vmem:[%s1460_s1 + $0x38] sm:$0xff] (!%p184_p3)   ;;  %v1308_v24 = vld [vmem:[%s1461_s2] ss:$0 sm:$0xff] (!%p184_p3) }
   0x9   : > { %1078 = vmatprep.subr.bf16.mxu0 (!%p184_p3), %v1165_v1  ;;  %1125 = vmatprep.subr.bf16.mxu1 (!%p184_p3), %v1165_v1  ;;  %v1313_v26 = vld [vmem:[%s1462_s3] ss:$0 sm:$0xff] (!%p184_p3) }
   0xc   : > { %1079 = vmatpush3.bf16.msra.mxu0 (!%p184_p3), %v1165_v1  ;;  %1133 = vmatpush3.bf16.msra.mxu1 (!%p184_p3), %v1165_v1 }
   0xd   : > { %1080 = vmatprep.subr.bf16.mxu0 (!%p184_p3), %v1166_v2  ;;  %1126 = vmatprep.subr.bf16.mxu1 (!%p184_p3), %v1166_v2 }
   0xe   : > { %s1469_s15 = smov (!%p218_p4, %s1202_s15), 1 }
   0xf   : > { %s1018_s25 = sshll.u32 %s1469_s15, 7 }
  0x10   : > { %s1272_s28 = scalar_lea.vmem %s1459_s0, %s1018_s25  ;;  %1081 = vmatpush3.bf16.msra.mxu0 %v1166_v2  ;;  %1134 = vmatpush3.bf16.msra.mxu1 %v1166_v2  ;;  %s1334_s23 = scalar_lea.vmem %s1463_s4, %s1018_s25 }
  0x11   : > { %v1172_v4 = vld [vmem:[%s1272_s28] sm:$0xff]   ;;  %1082 = vmatprep.subr.bf16.mxu0 %v1167_v3  ;;  %1127 = vmatprep.subr.bf16.mxu1 %v1167_v3  ;;  %v1174_v10 = vld [vmem:[%s1272_s28 + $0x8] sm:$0xff]   ;;  %v1176_v12 = vld [vmem:[%s1272_s28 + $0x10] sm:$0xff]  }
  0x12   : > { %v1173_v5 = vld [vmem:[%s1272_s28 + $0x40] sm:$0xff]   ;;  %1092 = vmatprep.mubr.bf16.mxu0 %v1172_v4  ;;  %v1175_v11 = vld [vmem:[%s1272_s28 + $0x48] sm:$0xff]   ;;  %v1177_v13 = vld [vmem:[%s1272_s28 + $0x50] sm:$0xff]  }
  0x13   : > { %1108 = vmatprep.mubr.bf16.mxu1 %v1173_v5  ;;  %v1178_v14 = vld [vmem:[%s1272_s28 + $0x18] sm:$0xff]   ;;  %v1180_v16 = vld [vmem:[%s1272_s28 + $0x20] sm:$0xff]   ;;  %v1182_v18 = vld [vmem:[%s1272_s28 + $0x28] sm:$0xff]  }
  0x14   : > { %1083 = vmatpush3.bf16.msra.mxu0 %v1167_v3  ;;  %1135 = vmatpush3.bf16.msra.mxu1 %v1167_v3  ;;  %v1179_v15 = vld [vmem:[%s1272_s28 + $0x58] sm:$0xff]   ;;  %v1181_v17 = vld [vmem:[%s1272_s28 + $0x60] sm:$0xff]   ;;  %v1183_v19 = vld [vmem:[%s1272_s28 + $0x68] sm:$0xff]  }
  0x15   : > { %1084 = vmatprep.subr.bf16.mxu0 %v1168_v6  ;;  %1128 = vmatprep.subr.bf16.mxu1 %v1168_v6  ;;  %v1184_v20 = vld [vmem:[%s1272_s28 + $0x30] sm:$0xff]   ;;  %v1186_v22 = vld [vmem:[%s1272_s28 + $0x38] sm:$0xff]  }
  0x16   : > { %v1185_v21 = vld [vmem:[%s1272_s28 + $0x70] sm:$0xff]   ;;  %v1187_v23 = vld [vmem:[%s1272_s28 + $0x78] sm:$0xff]  }
  0x18   : > { %1085 = vmatpush3.bf16.msra.mxu0 %v1168_v6  ;;  %1136 = vmatpush3.bf16.msra.mxu1 %v1168_v6 }
  0x19   : > { %1086 = vmatprep.subr.bf16.mxu0 %v1169_v7  ;;  %1129 = vmatprep.subr.bf16.mxu1 %v1169_v7 }
  0x1c   : > { %1087 = vmatpush3.bf16.msra.mxu0 %v1169_v7  ;;  %1137 = vmatpush3.bf16.msra.mxu1 %v1169_v7 }
  0x1d   : > { %1088 = vmatprep.subr.bf16.mxu0 %v1170_v8  ;;  %1130 = vmatprep.subr.bf16.mxu1 %v1170_v8 }
  0x20   : > { %1089 = vmatpush3.bf16.msra.mxu0 %v1170_v8  ;;  %1138 = vmatpush3.bf16.msra.mxu1 %v1170_v8 }
  0x21   : > { %1090 = vmatprep.subr.bf16.mxu0 %v1171_v9  ;;  %1131 = vmatprep.subr.bf16.mxu1 %v1171_v9 }
  0x24   : > { %1091 = vmatpush3.bf16.msra.mxu0 %v1171_v9  ;;  %1139 = vmatpush3.bf16.msra.mxu1 %v1171_v9 }
  0x27   : > { %1093 = vmatmul.mubr.bf16.vlgmr.msra.gmra.mrb[0].mxu0 %v1174_v10  ;;  %1109 = vmatmul.mubr.bf16.vlgmr.msra.gmra.mrb[0].mxu1 %v1175_v11 }
  0x28   : > { %1096 = vmatprep.mubr.bf16.mxu0 %v1176_v12  ;;  %1112 = vmatprep.mubr.bf16.mxu1 %v1177_v13 }
  0x2f   : > { %1097 = vmatmul.mubr.bf16.gmra.mrb[4].mxu0 %v1178_v14  ;;  %1113 = vmatmul.mubr.bf16.gmra.mrb[4].mxu1 %v1179_v15 }
  0x30   : > { %1100 = vmatprep.mubr.bf16.mxu0 %v1180_v16  ;;  %1116 = vmatprep.mubr.bf16.mxu1 %v1181_v17 }
  0x37   : > { %1101 = vmatmul.mubr.bf16.gmra.mrb[8].mxu0 %v1182_v18  ;;  %1117 = vmatmul.mubr.bf16.gmra.mrb[8].mxu1 %v1183_v19 }
  0x38   : > { %1104 = vmatprep.mubr.bf16.mxu0 %v1184_v20  ;;  %1120 = vmatprep.mubr.bf16.mxu1 %v1185_v21 }
  0x3f   : > { %1105 = vmatmul.mubr.bf16.gmra.mrb[12].mxu0 %v1186_v22  ;;  %1121 = vmatmul.mubr.bf16.gmra.mrb[12].mxu1 %v1187_v23 }
  0xfa   : > { %v1094_v25 = vpop.f32.mrb[0].mxu0  ;;  %v1110_v27 = vpop.f32.mrb[0].mxu1 }
  0xfb   : > { %v600_v28 = vmul.f32 %v1094_v25, %v1308_v24  ;;  %v616_v29 = vmul.f32 %v1110_v27, %v1308_v24  ;;  %v464_v30 = vpop.f32.mrb[1].mxu0  ;;  %v528_v31 = vpop.f32.mrb[1].mxu1 }
  0xfc   : > { %v598_v32 = vmul.f32 %v1308_v24, %v464_v30  ;;  %v614_v33 = vmul.f32 %v1308_v24, %v528_v31  ;;  %v1095_v34 = vpop.f32.mrb[2].mxu0  ;;  %v1111_v35 = vpop.f32.mrb[2].mxu1 }
  0xfd   : > { %v639_v36 = vadd.f32 %v1313_v26, %v600_v28  ;;  %v655_v37 = vadd.f32 %v1313_v26, %v616_v29  ;;  %v601_v38 = vmul.f32 %v1095_v34, %v1308_v24  ;;  %v617_v39 = vmul.f32 %v1111_v35, %v1308_v24  ;;  %v467_v40 = vpop.f32.mrb[3].mxu0  ;;  %v531_v41 = vpop.f32.mrb[3].mxu1 }
  0xfe   : > { %v637_v42 = vadd.f32 %v1313_v26, %v598_v32  ;;  %v653_v43 = vadd.f32 %v1313_v26, %v614_v33  ;;  %v599_v44 = vmul.f32 %v1308_v24, %v467_v40  ;;  %v615_v45 = vmul.f32 %v1308_v24, %v531_v41 }
  0xff   : > { %v671_v46 = vmax.f32 %v639_v36, 0.0  ;;  %v687_v47 = vmax.f32 %v655_v37, 0.0  ;;  %v640_v48 = vadd.f32 %v1313_v26, %v601_v38  ;;  %v656_v49 = vadd.f32 %v1313_v26, %v617_v39 }
 0x100   : > { %v669_v50 = vmax.f32 %v637_v42, 0.0  ;;  %v685_v51 = vmax.f32 %v653_v43, 0.0  ;;  %v638_v52 = vadd.f32 %v1313_v26, %v599_v44  ;;  %v654_v53 = vadd.f32 %v1313_v26, %v615_v45 }
 0x101   : > { %v1022_v54 = vpack.c.bf16 %v671_v46, %v671_v46  ;;  %v1038_v55 = vpack.c.bf16 %v687_v47, %v687_v47  ;;  %v672_v56 = vmax.f32 %v640_v48, 0.0  ;;  %v688_v57 = vmax.f32 %v656_v49, 0.0 }
 0x102   : > { %v1020_v58 = vpack.c.bf16 %v669_v50, %v669_v50  ;;  %v1036_v59 = vpack.c.bf16 %v685_v51, %v685_v51  ;;  %v670_v60 = vmax.f32 %v638_v52, 0.0  ;;  %v686_v61 = vmax.f32 %v654_v53, 0.0  ;;  %v1098_v62 = vpop.f32.mrb[4].mxu0  ;;  %v1114_v63 = vpop.f32.mrb[4].mxu1 }
 0x103   : > { %832 = vst.msk [vmem:[%s1334_s23 + $0x8] sm:$0xf] %vm829_vm0, %v1022_v54  ;;  %848 = vst.msk [vmem:[%s1334_s23 + $0x48] sm:$0xf] %vm829_vm0, %v1038_v55  ;;  %v1023_v0 = vpack.c.bf16 %v672_v56, %v672_v56  ;;  %v1039_v1 = vpack.c.bf16 %v688_v57, %v688_v57  ;;  %v604_v2 = vmul.f32 %v1098_v62, %v1308_v24  ;;  %v480_v4 = vpop.f32.mrb[5].mxu0  ;;  %v544_v5 = vpop.f32.mrb[5].mxu1 }
 0x104   : > { %v620_v3 = vmul.f32 %v1114_v63, %v1308_v24  ;;  %830 = vst.msk [vmem:[%s1334_s23] sm:$0xf] %vm829_vm0, %v1020_v58  ;;  %846 = vst.msk [vmem:[%s1334_s23 + $0x40] sm:$0xf] %vm829_vm0, %v1036_v59  ;;  %v1021_v6 = vpack.c.bf16 %v670_v60, %v670_v60  ;;  %v1037_v7 = vpack.c.bf16 %v686_v61, %v686_v61  ;;  %v1099_v10 = vpop.f32.mrb[6].mxu0  ;;  %v1115_v11 = vpop.f32.mrb[6].mxu1 }
 0x105   : > { %v602_v8 = vmul.f32 %v1308_v24, %v480_v4  ;;  %v618_v9 = vmul.f32 %v1308_v24, %v544_v5  ;;  %833 = vst.msk [vmem:[%s1334_s23 + $0xc] sm:$0xf] %vm829_vm0, %v1023_v0  ;;  %849 = vst.msk [vmem:[%s1334_s23 + $0x4c] sm:$0xf] %vm829_vm0, %v1039_v1  ;;  %v643_v12 = vadd.f32 %v1313_v26, %v604_v2  ;;  %v483_v16 = vpop.f32.mrb[7].mxu0  ;;  %v547_v17 = vpop.f32.mrb[7].mxu1 }
 0x106   : > { %v659_v13 = vadd.f32 %v1313_v26, %v620_v3  ;;  %v605_v14 = vmul.f32 %v1099_v10, %v1308_v24  ;;  %v621_v15 = vmul.f32 %v1115_v11, %v1308_v24  ;;  %831 = vst.msk [vmem:[%s1334_s23 + $0x4] sm:$0xf] %vm829_vm0, %v1021_v6  ;;  %847 = vst.msk [vmem:[%s1334_s23 + $0x44] sm:$0xf] %vm829_vm0, %v1037_v7 }
 0x107   : > { %v641_v18 = vadd.f32 %v1313_v26, %v602_v8  ;;  %v657_v19 = vadd.f32 %v1313_v26, %v618_v9  ;;  %v603_v20 = vmul.f32 %v1308_v24, %v483_v16  ;;  %v619_v21 = vmul.f32 %v1308_v24, %v547_v17 }
 0x108   : > { %v675_v22 = vmax.f32 %v643_v12, 0.0  ;;  %v691_v23 = vmax.f32 %v659_v13, 0.0  ;;  %v644_v25 = vadd.f32 %v1313_v26, %v605_v14  ;;  %v660_v27 = vadd.f32 %v1313_v26, %v621_v15 }
 0x109   : > { %v673_v28 = vmax.f32 %v641_v18, 0.0  ;;  %v689_v29 = vmax.f32 %v657_v19, 0.0  ;;  %v642_v30 = vadd.f32 %v1313_v26, %v603_v20  ;;  %v658_v31 = vadd.f32 %v1313_v26, %v619_v21 }
 0x10a   : > { %v1026_v32 = vpack.c.bf16 %v675_v22, %v675_v22  ;;  %v1042_v33 = vpack.c.bf16 %v691_v23, %v691_v23  ;;  %v676_v34 = vmax.f32 %v644_v25, 0.0  ;;  %v692_v35 = vmax.f32 %v660_v27, 0.0  ;;  %v1102_v40 = vpop.f32.mrb[8].mxu0  ;;  %v1118_v41 = vpop.f32.mrb[8].mxu1 }
 0x10b   : > { %v1024_v36 = vpack.c.bf16 %v673_v28, %v673_v28  ;;  %v1040_v37 = vpack.c.bf16 %v689_v29, %v689_v29  ;;  %v674_v38 = vmax.f32 %v642_v30, 0.0  ;;  %v690_v39 = vmax.f32 %v658_v31, 0.0  ;;  %v496_v46 = vpop.f32.mrb[9].mxu0  ;;  %v560_v47 = vpop.f32.mrb[9].mxu1 }
 0x10c   : > { %836 = vst.msk [vmem:[%s1334_s23 + $0x18] sm:$0xf] %vm829_vm0, %v1026_v32  ;;  %852 = vst.msk [vmem:[%s1334_s23 + $0x58] sm:$0xf] %vm829_vm0, %v1042_v33  ;;  %v1027_v42 = vpack.c.bf16 %v676_v34, %v676_v34  ;;  %v1043_v43 = vpack.c.bf16 %v692_v35, %v692_v35  ;;  %v608_v44 = vmul.f32 %v1102_v40, %v1308_v24  ;;  %v1103_v52 = vpop.f32.mrb[10].mxu0  ;;  %v1119_v53 = vpop.f32.mrb[10].mxu1 }
 0x10d   : > { %v624_v45 = vmul.f32 %v1118_v41, %v1308_v24  ;;  %834 = vst.msk [vmem:[%s1334_s23 + $0x10] sm:$0xf] %vm829_vm0, %v1024_v36  ;;  %850 = vst.msk [vmem:[%s1334_s23 + $0x50] sm:$0xf] %vm829_vm0, %v1040_v37  ;;  %v1025_v48 = vpack.c.bf16 %v674_v38, %v674_v38  ;;  %v1041_v49 = vpack.c.bf16 %v690_v39, %v690_v39  ;;  %v499_v58 = vpop.f32.mrb[11].mxu0  ;;  %v563_v59 = vpop.f32.mrb[11].mxu1 }
 0x10e   : > { %v606_v50 = vmul.f32 %v1308_v24, %v496_v46  ;;  %v622_v51 = vmul.f32 %v1308_v24, %v560_v47  ;;  %837 = vst.msk [vmem:[%s1334_s23 + $0x1c] sm:$0xf] %vm829_vm0, %v1027_v42  ;;  %853 = vst.msk [vmem:[%s1334_s23 + $0x5c] sm:$0xf] %vm829_vm0, %v1043_v43  ;;  %v647_v54 = vadd.f32 %v1313_v26, %v608_v44 }
 0x10f   : > { %v663_v55 = vadd.f32 %v1313_v26, %v624_v45  ;;  %v609_v56 = vmul.f32 %v1103_v52, %v1308_v24  ;;  %v625_v57 = vmul.f32 %v1119_v53, %v1308_v24  ;;  %835 = vst.msk [vmem:[%s1334_s23 + $0x14] sm:$0xf] %vm829_vm0, %v1025_v48  ;;  %851 = vst.msk [vmem:[%s1334_s23 + $0x54] sm:$0xf] %vm829_vm0, %v1041_v49 }
 0x110   : > { %v645_v60 = vadd.f32 %v1313_v26, %v606_v50  ;;  %v661_v61 = vadd.f32 %v1313_v26, %v622_v51  ;;  %v607_v62 = vmul.f32 %v1308_v24, %v499_v58  ;;  %v623_v63 = vmul.f32 %v1308_v24, %v563_v59 }
 0x111   : > { %v679_v0 = vmax.f32 %v647_v54, 0.0  ;;  %v695_v1 = vmax.f32 %v663_v55, 0.0  ;;  %v648_v2 = vadd.f32 %v1313_v26, %v609_v56  ;;  %v664_v3 = vadd.f32 %v1313_v26, %v625_v57 }
 0x112   : > { %v677_v4 = vmax.f32 %v645_v60, 0.0  ;;  %v693_v5 = vmax.f32 %v661_v61, 0.0  ;;  %v646_v6 = vadd.f32 %v1313_v26, %v607_v62  ;;  %v662_v7 = vadd.f32 %v1313_v26, %v623_v63  ;;  %v1106_v16 = vpop.f32.mrb[12].mxu0  ;;  %v1122_v17 = vpop.f32.mrb[12].mxu1 }
 0x113   : > { %v1030_v8 = vpack.c.bf16 %v679_v0, %v679_v0  ;;  %v1046_v9 = vpack.c.bf16 %v695_v1, %v695_v1  ;;  %v680_v10 = vmax.f32 %v648_v2, 0.0  ;;  %v696_v11 = vmax.f32 %v664_v3, 0.0  ;;  %v512_v22 = vpop.f32.mrb[13].mxu0  ;;  %v576_v23 = vpop.f32.mrb[13].mxu1 }
 0x114   : > { %v1028_v12 = vpack.c.bf16 %v677_v4, %v677_v4  ;;  %v1044_v13 = vpack.c.bf16 %v693_v5, %v693_v5  ;;  %v678_v14 = vmax.f32 %v646_v6, 0.0  ;;  %v694_v15 = vmax.f32 %v662_v7, 0.0  ;;  %v1107_v30 = vpop.f32.mrb[14].mxu0  ;;  %v1123_v31 = vpop.f32.mrb[14].mxu1 }
 0x115   : > { %840 = vst.msk [vmem:[%s1334_s23 + $0x28] sm:$0xf] %vm829_vm0, %v1030_v8  ;;  %856 = vst.msk [vmem:[%s1334_s23 + $0x68] sm:$0xf] %vm829_vm0, %v1046_v9  ;;  %v1031_v18 = vpack.c.bf16 %v680_v10, %v680_v10  ;;  %v1047_v19 = vpack.c.bf16 %v696_v11, %v696_v11  ;;  %v612_v20 = vmul.f32 %v1106_v16, %v1308_v24  ;;  %v515_v36 = vpop.f32.mrb[15].mxu0  ;;  %v579_v37 = vpop.f32.mrb[15].mxu1 }
 0x116   : > { %v628_v21 = vmul.f32 %v1122_v17, %v1308_v24  ;;  %838 = vst.msk [vmem:[%s1334_s23 + $0x20] sm:$0xf] %vm829_vm0, %v1028_v12  ;;  %854 = vst.msk [vmem:[%s1334_s23 + $0x60] sm:$0xf] %vm829_vm0, %v1044_v13  ;;  %v1029_v25 = vpack.c.bf16 %v678_v14, %v678_v14  ;;  %v1045_v27 = vpack.c.bf16 %v694_v15, %v694_v15 }
 0x117   : > { %v610_v28 = vmul.f32 %v1308_v24, %v512_v22  ;;  %v626_v29 = vmul.f32 %v1308_v24, %v576_v23  ;;  %841 = vst.msk [vmem:[%s1334_s23 + $0x2c] sm:$0xf] %vm829_vm0, %v1031_v18  ;;  %857 = vst.msk [vmem:[%s1334_s23 + $0x6c] sm:$0xf] %vm829_vm0, %v1047_v19  ;;  %v651_v32 = vadd.f32 %v1313_v26, %v612_v20 }
 0x118   : > { %v667_v33 = vadd.f32 %v1313_v26, %v628_v21  ;;  %v613_v34 = vmul.f32 %v1107_v30, %v1308_v24  ;;  %v629_v35 = vmul.f32 %v1123_v31, %v1308_v24  ;;  %839 = vst.msk [vmem:[%s1334_s23 + $0x24] sm:$0xf] %vm829_vm0, %v1029_v25  ;;  %855 = vst.msk [vmem:[%s1334_s23 + $0x64] sm:$0xf] %vm829_vm0, %v1045_v27 }
 0x119   : > { %v649_v38 = vadd.f32 %v1313_v26, %v610_v28  ;;  %v665_v39 = vadd.f32 %v1313_v26, %v626_v29  ;;  %v611_v40 = vmul.f32 %v1308_v24, %v515_v36  ;;  %v627_v41 = vmul.f32 %v1308_v24, %v579_v37 }
 0x11a   : > { %v683_v42 = vmax.f32 %v651_v32, 0.0  ;;  %v699_v43 = vmax.f32 %v667_v33, 0.0  ;;  %v652_v44 = vadd.f32 %v1313_v26, %v613_v34  ;;  %v668_v45 = vadd.f32 %v1313_v26, %v629_v35 }
 0x11b   : > { %v681_v46 = vmax.f32 %v649_v38, 0.0  ;;  %v697_v47 = vmax.f32 %v665_v39, 0.0  ;;  %v650_v48 = vadd.f32 %v1313_v26, %v611_v40  ;;  %v666_v49 = vadd.f32 %v1313_v26, %v627_v41 }
 0x11c   : > { %v1034_v50 = vpack.c.bf16 %v683_v42, %v683_v42  ;;  %v1050_v51 = vpack.c.bf16 %v699_v43, %v699_v43  ;;  %v684_v24 = vmax.f32 %v652_v44, 0.0  ;;  %v700_v52 = vmax.f32 %v668_v45, 0.0 }
 0x11d   : > { %v1032_v53 = vpack.c.bf16 %v681_v46, %v681_v46  ;;  %v1048_v54 = vpack.c.bf16 %v697_v47, %v697_v47  ;;  %v682_v55 = vmax.f32 %v650_v48, 0.0  ;;  %v698_v56 = vmax.f32 %v666_v49, 0.0 }
 0x11e   : > { %844 = vst.msk [vmem:[%s1334_s23 + $0x38] sm:$0xf] %vm829_vm0, %v1034_v50  ;;  %860 = vst.msk [vmem:[%s1334_s23 + $0x78] sm:$0xf] %vm829_vm0, %v1050_v51  ;;  %v1035_v57 = vpack.c.bf16 %v684_v24, %v684_v24  ;;  %v1051_v58 = vpack.c.bf16 %v700_v52, %v700_v52 }
 0x11f   : > { %842 = vst.msk [vmem:[%s1334_s23 + $0x30] sm:$0xf] %vm829_vm0, %v1032_v53  ;;  %858 = vst.msk [vmem:[%s1334_s23 + $0x70] sm:$0xf] %vm829_vm0, %v1048_v54  ;;  %v1033_v26 = vpack.c.bf16 %v682_v55, %v682_v55  ;;  %v1049_v59 = vpack.c.bf16 %v698_v56, %v698_v56 }
 0x120   : > { %845 = vst.msk [vmem:[%s1334_s23 + $0x3c] sm:$0xf] %vm829_vm0, %v1035_v57  ;;  %861 = vst.msk [vmem:[%s1334_s23 + $0x7c] sm:$0xf] %vm829_vm0, %v1051_v58 }
 0x121   : > { %843 = vst.msk [vmem:[%s1334_s23 + $0x34] sm:$0xf] %vm829_vm0, %v1033_v26  ;;  %859 = vst.msk [vmem:[%s1334_s23 + $0x74] sm:$0xf] %vm829_vm0, %v1049_v59 }
 0x122 PF: > { %s14_s17 = sadd.s32 1, %s1210_s17   ;;  %s1464_s15 = smov %s1206_s16 }
 0x123   : > { %p11_p5 = scmp.ge.s32.totalorder %s14_s17, 4   ;;  %s1465_s16 = smov %s1467_s18 }
 0x125   :  { %13 = sbr.rel (!%p11_p5) target bundleno = 2 (0x2), region = 66 }

// kernel: _lambda_.9
= control target key start
LH: loop header
LB: loop body
LE: loop exit
PB: predicated region body
PF: predicated region fallthrough
CT: control target
= control target key end

     0   :  { %s745_s15 = smov 0   ;;  %s747_s16 = smov 0   ;;  %s829_s0 = inlined_call_operand.vmem [shape: bf16[2,64,128], index: 0, kind: input, shape index: {}]   ;;  %s830_s1 = inlined_call_operand.vmem [shape: bf16[128,8], index: 1, kind: input, shape index: {}]   ;;  %s831_s2 = inlined_call_operand.vmem [shape: f32[1,8], index: 2, kind: input, shape index: {}]   ;;  %s832_s3 = inlined_call_operand.vmem [shape: f32[1,8], index: 3, kind: input, shape index: {}]   ;;  %s833_s4 = inlined_call_operand.vmem [shape: bf16[2,64,8], index: 4, kind: output, shape index: {}]  }
   0x1   :  { %s749_s17 = smov 0  }
   0x2 LB: > { %s26_s18 = sadd.s32 1, %s714_s16  ;;  %p569_p0 = scmp.ge.s32.totalorder %s718_s17, 1  ;;  %s718_s17 = sphi %s749_s17, %s14_s17   ;;  %s714_s16 = sphi %s747_s16, %s835_s16   ;;  %s710_s15 = sphi %s745_s15, %s834_s15  }
   0x3   : > { %p28_p1 = scmp.ge.s32.totalorder %s26_s18, 2  ;;  %p183_p2 = scmp.lt.s32.totalorder %s718_s17, 3 }
   0x5   : > { %s837_s18 = smov (%p28_p1, %s26_s18), 0  ;;  %p184_p3 = pnand %p569_p0, %p183_p2 }
   0x6   : > { %v684_v0 = vld [vmem:[%s830_s1] sm:$0xff] (!%p184_p3)   ;;  %p218_p4 = scmp.lt.s32.totalorder (!%p184_p3), %s710_s15, 1  ;;  %v685_v1 = vld [vmem:[%s830_s1 + $0x8] sm:$0xff] (!%p184_p3)   ;;  %v686_v2 = vld [vmem:[%s830_s1 + $0x10] sm:$0xff] (!%p184_p3)   ;;  %vm469_vm0 = vcmask (!%p184_p3), 60416  }
   0x7   : > { %187 = sbr.rel (%p184_p3) target bundleno = 263 (0x107), region = 36  ;;  %620 = vmatprep.subr.bf16.mxu0 (!%p184_p3), %v684_v0  ;;  %644 = vmatprep.subr.bf16.mxu1 (!%p184_p3), %v684_v0  ;;  %v687_v3 = vld [vmem:[%s830_s1 + $0x18] sm:$0xff] (!%p184_p3)   ;;  %v688_v6 = vld [vmem:[%s830_s1 + $0x20] sm:$0xff] (!%p184_p3)   ;;  %v689_v7 = vld [vmem:[%s830_s1 + $0x28] sm:$0xff] (!%p184_p3)  }
   0x8   : > { %621 = vmatpush3.bf16.msra.mxu0 (!%p184_p3), %v684_v0  ;;  %652 = vmatpush3.bf16.msra.mxu1 (!%p184_p3), %v684_v0  ;;  %v690_v8 = vld [vmem:[%s830_s1 + $0x30] sm:$0xff] (!%p184_p3)   ;;  %v691_v9 = vld [vmem:[%s830_s1 + $0x38] sm:$0xff] (!%p184_p3)   ;;  %v586_v12 = vld [vmem:[%s831_s2] ss:$0 sm:$0xff] (!%p184_p3) }
   0x9   : > { %622 = vmatprep.subr.bf16.mxu0 (!%p184_p3), %v685_v1  ;;  %645 = vmatprep.subr.bf16.mxu1 (!%p184_p3), %v685_v1  ;;  %v587_v14 = vld [vmem:[%s832_s3] ss:$0 sm:$0xff] (!%p184_p3) }
   0xc   : > { %623 = vmatpush3.bf16.msra.mxu0 (!%p184_p3), %v685_v1  ;;  %653 = vmatpush3.bf16.msra.mxu1 (!%p184_p3), %v685_v1 }
   0xd   : > { %624 = vmatprep.subr.bf16.mxu0 (!%p184_p3), %v686_v2  ;;  %646 = vmatprep.subr.bf16.mxu1 (!%p184_p3), %v686_v2 }
   0xe   : > { %s839_s15 = smov (!%p218_p4, %s710_s15), 1 }
   0xf   : > { %s598_s25 = sshll.u32 %s839_s15, 5 }
  0x10   : > { %s780_s28 = scalar_lea.vmem %s829_s0, %s598_s25  ;;  %625 = vmatpush3.bf16.msra.mxu0 %v686_v2  ;;  %654 = vmatpush3.bf16.msra.mxu1 %v686_v2  ;;  %s235_s23 = scalar_lea.vmem %s833_s4, %s598_s25 }
  0x11   : > { %v692_v4 = vld [vmem:[%s780_s28] sm:$0xff]   ;;  %v693_v5 = vld [vmem:[%s780_s28 + $0x10] sm:$0xff]   ;;  %626 = vmatprep.subr.bf16.mxu0 %v687_v3  ;;  %647 = vmatprep.subr.bf16.mxu1 %v687_v3  ;;  %v694_v10 = vld [vmem:[%s780_s28 + $0x8] sm:$0xff]  }
  0x12   : > { %636 = vmatprep.mubr.bf16.mxu0 %v692_v4  ;;  %640 = vmatprep.mubr.bf16.mxu1 %v693_v5  ;;  %v695_v11 = vld [vmem:[%s780_s28 + $0x18] sm:$0xff]  }
  0x14   : > { %627 = vmatpush3.bf16.msra.mxu0 %v687_v3  ;;  %655 = vmatpush3.bf16.msra.mxu1 %v687_v3 }
  0x15   : > { %628 = vmatprep.subr.bf16.mxu0 %v688_v6  ;;  %648 = vmatprep.subr.bf16.mxu1 %v688_v6 }
  0x18   : > { %629 = vmatpush3.bf16.msra.mxu0 %v688_v6  ;;  %656 = vmatpush3.bf16.msra.mxu1 %v688_v6 }
  0x19   : > { %630 = vmatprep.subr.bf16.mxu0 %v689_v7  ;;  %649 = vmatprep.subr.bf16.mxu1 %v689_v7 }
  0x1c   : > { %631 = vmatpush3.bf16.msra.mxu0 %v689_v7  ;;  %657 = vmatpush3.bf16.msra.mxu1 %v689_v7 }
  0x1d   : > { %632 = vmatprep.subr.bf16.mxu0 %v690_v8  ;;  %650 = vmatprep.subr.bf16.mxu1 %v690_v8 }
  0x20   : > { %633 = vmatpush3.bf16.msra.mxu0 %v690_v8  ;;  %658 = vmatpush3.bf16.msra.mxu1 %v690_v8 }
  0x21   : > { %634 = vmatprep.subr.bf16.mxu0 %v691_v9  ;;  %651 = vmatprep.subr.bf16.mxu1 %v691_v9 }
  0x24   : > { %635 = vmatpush3.bf16.msra.mxu0 %v691_v9  ;;  %659 = vmatpush3.bf16.msra.mxu1 %v691_v9 }
  0x27   : > { %637 = vmatmul.mubr.bf16.vlgmr.msra.gmra.mrb[0].mxu0 %v694_v10  ;;  %641 = vmatmul.mubr.bf16.vlgmr.msra.gmra.mrb[0].mxu1 %v695_v11 }
  0xfa   : > { %v638_v13 = vpop.f32.mrb[0].mxu0  ;;  %v642_v15 = vpop.f32.mrb[0].mxu1 }
  0xfb   : > { %v408_v16 = vmul.f32 %v638_v13, %v586_v12  ;;  %v412_v17 = vmul.f32 %v642_v15, %v586_v12  ;;  %v368_v18 = vpop.f32.mrb[1].mxu0  ;;  %v384_v19 = vpop.f32.mrb[1].mxu1 }
  0xfc   : > { %v406_v20 = vmul.f32 %v586_v12, %v368_v18  ;;  %v410_v21 = vmul.f32 %v586_v12, %v384_v19  ;;  %v639_v22 = vpop.f32.mrb[2].mxu0  ;;  %v643_v23 = vpop.f32.mrb[2].mxu1 }
  0xfd   : > { %v423_v24 = vadd.f32 %v587_v14, %v408_v16  ;;  %v427_v25 = vadd.f32 %v587_v14, %v412_v17  ;;  %v409_v26 = vmul.f32 %v639_v22, %v586_v12  ;;  %v413_v27 = vmul.f32 %v643_v23, %v586_v12  ;;  %v371_v28 = vpop.f32.mrb[3].mxu0  ;;  %v387_v29 = vpop.f32.mrb[3].mxu1 }
  0xfe   : > { %v421_v30 = vadd.f32 %v587_v14, %v406_v20  ;;  %v425_v31 = vadd.f32 %v587_v14, %v410_v21  ;;  %v407_v32 = vmul.f32 %v586_v12, %v371_v28  ;;  %v411_v33 = vmul.f32 %v586_v12, %v387_v29 }
  0xff   : > { %v431_v34 = vmax.f32 %v423_v24, 0.0  ;;  %v435_v35 = vmax.f32 %v427_v25, 0.0  ;;  %v424_v36 = vadd.f32 %v587_v14, %v409_v26  ;;  %v428_v37 = vadd.f32 %v587_v14, %v413_v27 }
 0x100   : > { %v429_v38 = vmax.f32 %v421_v30, 0.0  ;;  %v433_v39 = vmax.f32 %v425_v31, 0.0  ;;  %v422_v40 = vadd.f32 %v587_v14, %v407_v32  ;;  %v426_v41 = vadd.f32 %v587_v14, %v411_v33 }
 0x101   : > { %v602_v42 = vpack.c.bf16 %v431_v34, %v431_v34  ;;  %v606_v43 = vpack.c.bf16 %v435_v35, %v435_v35  ;;  %v432_v44 = vmax.f32 %v424_v36, 0.0  ;;  %v436_v45 = vmax.f32 %v428_v37, 0.0 }
 0x102   : > { %v600_v46 = vpack.c.bf16 %v429_v38, %v429_v38  ;;  %v604_v47 = vpack.c.bf16 %v433_v39, %v433_v39  ;;  %v430_v48 = vmax.f32 %v422_v40, 0.0  ;;  %v434_v49 = vmax.f32 %v426_v41, 0.0 }
 0x103   : > { %472 = vst.msk [vmem:[%s235_s23 + $0x8] sm:$0xf] %vm469_vm0, %v602_v42  ;;  %476 = vst.msk [vmem:[%s235_s23 + $0x18] sm:$0xf] %vm469_vm0, %v606_v43  ;;  %v603_v50 = vpack.c.bf16 %v432_v44, %v432_v44  ;;  %v607_v51 = vpack.c.bf16 %v436_v45, %v436_v45 }
 0x104   : > { %470 = vst.msk [vmem:[%s235_s23] sm:$0xf] %vm469_vm0, %v600_v46  ;;  %474 = vst.msk [vmem:[%s235_s23 + $0x10] sm:$0xf] %vm469_vm0, %v604_v47  ;;  %v601_v52 = vpack.c.bf16 %v430_v48, %v430_v48  ;;  %v605_v53 = vpack.c.bf16 %v434_v49, %v434_v49 }
 0x105   : > { %473 = vst.msk [vmem:[%s235_s23 + $0xc] sm:$0xf] %vm469_vm0, %v603_v50  ;;  %477 = vst.msk [vmem:[%s235_s23 + $0x1c] sm:$0xf] %vm469_vm0, %v607_v51 }
 0x106   : > { %471 = vst.msk [vmem:[%s235_s23 + $0x4] sm:$0xf] %vm469_vm0, %v601_v52  ;;  %475 = vst.msk [vmem:[%s235_s23 + $0x14] sm:$0xf] %vm469_vm0, %v605_v53 }
 0x107 PF: > { %s14_s17 = sadd.s32 1, %s718_s17   ;;  %s834_s15 = smov %s714_s16 }
 0x108   : > { %p11_p5 = scmp.ge.s32.totalorder %s14_s17, 4   ;;  %s835_s16 = smov %s837_s18 }
 0x10a   :  { %13 = sbr.rel (!%p11_p5) target bundleno = 2 (0x2), region = 66 }

// kernel: _lambda_.10
= control target key start
LH: loop header
LB: loop body
LE: loop exit
PB: predicated region body
PF: predicated region fallthrough
CT: control target
= control target key end

     0   :  { %s612_s15 = smov 0   ;;  %s614_s16 = smov 0   ;;  %s682_s0 = inlined_call_operand.vmem [shape: bf16[2,16,128], index: 0, kind: input, shape index: {}]   ;;  %s683_s1 = inlined_call_operand.vmem [shape: bf16[128,16], index: 1, kind: input, shape index: {}]   ;;  %s684_s2 = inlined_call_operand.vmem [shape: f32[1,16], index: 2, kind: input, shape index: {}]   ;;  %s685_s3 = inlined_call_operand.vmem [shape: f32[1,16], index: 3, kind: input, shape index: {}]   ;;  %s686_s4 = inlined_call_operand.vmem [shape: bf16[2,16,16], index: 4, kind: output, shape index: {}]  }
   0x1   :  { %s616_s17 = smov 0  }
   0x2 LB: > { %s26_s18 = sadd.s32 1, %s579_s16  ;;  %p473_p0 = scmp.ge.s32.totalorder %s583_s17, 1  ;;  %s583_s17 = sphi %s616_s17, %s14_s17   ;;  %s579_s16 = sphi %s614_s16, %s688_s16   ;;  %s575_s15 = sphi %s612_s15, %s687_s15  }
   0x3   : > { %p28_p1 = scmp.ge.s32.totalorder %s26_s18, 2  ;;  %p183_p2 = scmp.lt.s32.totalorder %s583_s17, 3 }
   0x5   : > { %s690_s18 = smov (%p28_p1, %s26_s18), 0  ;;  %p184_p3 = pnand %p473_p0, %p183_p2 }
   0x6   : > { %v552_v0 = vld [vmem:[%s683_s1] sm:$0xff] (!%p184_p3)   ;;  %v585_v1 = vmov (!%p184_p3), 0.0   ;;  %v553_v2 = vld [vmem:[%s683_s1 + $0x8] sm:$0xff] (!%p184_p3)   ;;  %vm586_vm0 = vmmov (!%p184_p3), 0   ;;  %p218_p4 = scmp.lt.s32.totalorder (!%p184_p3), %s575_s15, 1  ;;  %v554_v3 = vld [vmem:[%s683_s1 + $0x10] sm:$0xff] (!%p184_p3)  }
   0x7   : > { %187 = sbr.rel (%p184_p3) target bundleno = 262 (0x106), region = 36  ;;  %506 = vmatprep.subr.bf16.mxu0 (!%p184_p3), %v585_v1  ;;  %522 = vmatprep.mubr.msk.bf16.mxu0 (!%p184_p3), %vm586_vm0, %v585_v1  ;;  %v555_v4 = vld [vmem:[%s683_s1 + $0x18] sm:$0xff] (!%p184_p3)   ;;  %v556_v5 = vld [vmem:[%s683_s1 + $0x20] sm:$0xff] (!%p184_p3)   ;;  %v557_v6 = vld [vmem:[%s683_s1 + $0x28] sm:$0xff] (!%p184_p3)   ;;  %vm379_vm1 = vcmask (!%p184_p3), 125952  }
   0x8   : > { %507 = vmatpush3.bf16.msra.mxu0 (!%p184_p3), %v552_v0  ;;  %v558_v7 = vld [vmem:[%s683_s1 + $0x30] sm:$0xff] (!%p184_p3)   ;;  %v559_v8 = vld [vmem:[%s683_s1 + $0x38] sm:$0xff] (!%p184_p3)   ;;  %v487_v10 = vld [vmem:[%s684_s2] ss:$0 sm:$0xff] (!%p184_p3) }
   0x9   : > { %508 = vmatprep.subr.bf16.mxu0 (!%p184_p3), %v585_v1  ;;  %v488_v12 = vld [vmem:[%s685_s3] ss:$0 sm:$0xff] (!%p184_p3) }
   0xc   : > { %509 = vmatpush3.bf16.msra.mxu0 (!%p184_p3), %v553_v2 }
   0xd   : > { %510 = vmatprep.subr.bf16.mxu0 (!%p184_p3), %v585_v1 }
   0xe   : > { %s692_s15 = smov (!%p218_p4, %s575_s15), 1 }
   0xf   : > { %s493_s25 = sshll.u32 %s692_s15, 3 }
  0x10   : > { %s225_s28 = scalar_lea.vmem %s682_s0, %s493_s25  ;;  %511 = vmatpush3.bf16.msra.mxu0 %v554_v3  ;;  %s235_s23 = scalar_lea.vmem %s686_s4, %s493_s25 }
  0x11   : > { %512 = vmatprep.subr.bf16.mxu0 %v585_v1  ;;  %v560_v9 = vld [vmem:[%s225_s28] sm:$0xff]  }
  0x14   : > { %513 = vmatpush3.bf16.msra.mxu0 %v555_v4 }
  0x15   : > { %514 = vmatprep.subr.bf16.mxu0 %v585_v1 }
  0x18   : > { %515 = vmatpush3.bf16.msra.mxu0 %v556_v5 }
  0x19   : > { %516 = vmatprep.subr.bf16.mxu0 %v585_v1 }
  0x1c   : > { %517 = vmatpush3.bf16.msra.mxu0 %v557_v6 }
  0x1d   : > { %518 = vmatprep.subr.bf16.mxu0 %v585_v1 }
  0x20   : > { %519 = vmatpush3.bf16.msra.mxu0 %v558_v7 }
  0x21   : > { %520 = vmatprep.subr.bf16.mxu0 %v585_v1 }
  0x24   : > { %521 = vmatpush3.bf16.msra.mxu0 %v559_v8 }
  0x27   : > { %523 = vmatmul.mubr.bf16.vlgmr.msra.gmra.mrb[0].mxu0 %v560_v9 }
  0xfa   : > { %v344_v11 = vpop.f32.mrb[0].mxu0 }
  0xfb   : > { %v358_v13 = vmul.f32 %v487_v10, %v344_v11  ;;  %v524_v14 = vpop.f32.mrb[1].mxu0 }
  0xfc   : > { %v347_v15 = vpop.f32.mrb[2].mxu0 }
  0xfd   : > { %v367_v16 = vadd.f32 %v488_v12, %v358_v13  ;;  %v359_v17 = vmul.f32 %v487_v10, %v347_v15  ;;  %v525_v18 = vpop.f32.mrb[3].mxu0 }
  0xff   : > { %v369_v19 = vmax.f32 %v367_v16, 0.0  ;;  %v368_v20 = vadd.f32 %v488_v12, %v359_v17 }
 0x101   : > { %v495_v21 = vpack.c.bf16 %v369_v19, %v369_v19  ;;  %v370_v22 = vmax.f32 %v368_v20, 0.0 }
 0x103   : > { %380 = vst.msk [vmem:[%s235_s23] sm:$0xf] %vm379_vm1, %v495_v21  ;;  %v496_v23 = vpack.c.bf16 %v370_v22, %v370_v22 }
 0x105   : > { %381 = vst.msk [vmem:[%s235_s23 + $0x4] sm:$0xf] %vm379_vm1, %v496_v23 }
 0x106 PF: > { %s14_s17 = sadd.s32 1, %s583_s17   ;;  %s687_s15 = smov %s579_s16 }
 0x107   : > { %p11_p5 = scmp.ge.s32.totalorder %s14_s17, 4   ;;  %s688_s16 = smov %s690_s18 }
 0x109   :  { %13 = sbr.rel (!%p11_p5) target bundleno = 2 (0x2), region = 66 }

// kernel: _lambda_.11
= control target key start
LH: loop header
LB: loop body
LE: loop exit
PB: predicated region body
PF: predicated region fallthrough
CT: control target
= control target key end

     0   :  { %s652_s15 = smov 0   ;;  %s654_s16 = smov 0   ;;  %s743_s0 = inlined_call_operand.vmem [shape: bf16[2,4,256], index: 0, kind: input, shape index: {}]   ;;  %s744_s1 = inlined_call_operand.vmem [shape: bf16[256,32], index: 1, kind: input, shape index: {}]   ;;  %s745_s2 = inlined_call_operand.vmem [shape: f32[1,32], index: 2, kind: input, shape index: {}]   ;;  %s746_s3 = inlined_call_operand.vmem [shape: f32[1,32], index: 3, kind: input, shape index: {}]   ;;  %s747_s4 = inlined_call_operand.vmem [shape: bf16[2,4,32], index: 4, kind: output, shape index: {}]  }
   0x1   :  { %s656_s17 = smov 0  }
   0x2 LB: > { %s26_s18 = sadd.s32 1, %s621_s16  ;;  %p515_p0 = scmp.ge.s32.totalorder %s625_s17, 1  ;;  %s625_s17 = sphi %s656_s17, %s14_s17   ;;  %s621_s16 = sphi %s654_s16, %s749_s16   ;;  %s617_s15 = sphi %s652_s15, %s748_s15  }
   0x3   : > { %p28_p1 = scmp.ge.s32.totalorder %s26_s18, 2  ;;  %p182_p2 = scmp.lt.s32.totalorder %s625_s17, 3 }
   0x5   : > { %s751_s18 = smov (%p28_p1, %s26_s18), 0  ;;  %p183_p3 = pnand %p515_p0, %p182_p2 }
   0x6   : > { %v587_v0 = vld [vmem:[%s744_s1 + $0x40] sm:$0xff] (!%p183_p3)   ;;  %v589_v2 = vld [vmem:[%s744_s1 + $0x48] sm:$0xff] (!%p183_p3)   ;;  %p214_p4 = scmp.lt.s32.totalorder (!%p183_p3), %s617_s15, 1  ;;  %v591_v4 = vld [vmem:[%s744_s1 + $0x50] sm:$0xff] (!%p183_p3)   ;;  %vm429_vm0 = vcmask (!%p183_p3), 254976  }
   0x7   : > { %186 = sbr.rel (%p183_p3) target bundleno = 263 (0x107), region = 36  ;;  %v588_v1 = vld [vmem:[%s744_s1] sm:$0xff] (!%p183_p3)   ;;  %541 = vmatprep.subr.bf16.mxu0 (!%p183_p3), %v587_v0  ;;  %v590_v3 = vld [vmem:[%s744_s1 + $0x8] sm:$0xff] (!%p183_p3)   ;;  %v592_v5 = vld [vmem:[%s744_s1 + $0x10] sm:$0xff] (!%p183_p3)  }
   0x8   : > { %542 = vmatpush3.bf16.msra.mxu0 (!%p183_p3), %v588_v1  ;;  %v593_v6 = vld [vmem:[%s744_s1 + $0x58] sm:$0xff] (!%p183_p3)   ;;  %v595_v8 = vld [vmem:[%s744_s1 + $0x60] sm:$0xff] (!%p183_p3)   ;;  %v597_v10 = vld [vmem:[%s744_s1 + $0x68] sm:$0xff] (!%p183_p3)  }
   0x9   : > { %543 = vmatprep.subr.bf16.mxu0 (!%p183_p3), %v589_v2  ;;  %v594_v7 = vld [vmem:[%s744_s1 + $0x18] sm:$0xff] (!%p183_p3)   ;;  %v596_v9 = vld [vmem:[%s744_s1 + $0x20] sm:$0xff] (!%p183_p3)   ;;  %v598_v13 = vld [vmem:[%s744_s1 + $0x28] sm:$0xff] (!%p183_p3)  }
   0xa   : > { %v599_v14 = vld [vmem:[%s744_s1 + $0x70] sm:$0xff] (!%p183_p3)   ;;  %v601_v16 = vld [vmem:[%s744_s1 + $0x78] sm:$0xff] (!%p183_p3)   ;;  %v536_v20 = vld [vmem:[%s745_s2] ss:$0 sm:$0xff] (!%p183_p3) }
   0xb   : > { %v600_v15 = vld [vmem:[%s744_s1 + $0x30] sm:$0xff] (!%p183_p3)   ;;  %v602_v17 = vld [vmem:[%s744_s1 + $0x38] sm:$0xff] (!%p183_p3)   ;;  %v537_v23 = vld [vmem:[%s746_s3] ss:$0 sm:$0xff] (!%p183_p3) }
   0xc   : > { %544 = vmatpush3.bf16.msra.mxu0 (!%p183_p3), %v590_v3 }
   0xd   : > { %545 = vmatprep.subr.bf16.mxu0 (!%p183_p3), %v591_v4 }
   0xe   : > { %s753_s15 = smov (!%p214_p4, %s617_s15), 1 }
   0xf   : > { %s540_s7 = sshll.u32 %s753_s15, 2  ;;  %s518_s11 = sshll.u32 %s753_s15, 1 }
  0x10   : > { %546 = vmatpush3.bf16.msra.mxu0 %v592_v5  ;;  %s222_s14 = scalar_lea.vmem %s743_s0, %s540_s7 }
  0x11   : > { %547 = vmatprep.subr.bf16.mxu0 %v593_v6  ;;  %v519_v11 = vld.sshfl [vmem:[%s222_s14] sm:$0x33 pattern:$0x76325410]  ;;  %s229_s14 = scalar_lea.vmem %s747_s4, %s518_s11 }
  0x12   : > { %v272_v12 = vcombine.high %v519_v11, %v519_v11 }
  0x14   : > { %548 = vmatpush3.bf16.msra.mxu0 %v594_v7  ;;  %403 = vmatprep.mubr.bf16.mxu0 %v272_v12 }
  0x15   : > { %549 = vmatprep.subr.bf16.mxu0 %v595_v8 }
  0x18   : > { %550 = vmatpush3.bf16.msra.mxu0 %v596_v9 }
  0x19   : > { %551 = vmatprep.subr.bf16.mxu0 %v597_v10 }
  0x1c   : > { %552 = vmatpush3.bf16.msra.mxu0 %v598_v13 }
  0x1d   : > { %553 = vmatprep.subr.bf16.mxu0 %v599_v14 }
  0x20   : > { %554 = vmatpush3.bf16.msra.mxu0 %v600_v15 }
  0x21   : > { %555 = vmatprep.subr.bf16.mxu0 %v601_v16 }
  0x24   : > { %556 = vmatpush3.bf16.msra.mxu0 %v602_v17 }
  0x27   : > { %404 = vmatmul.mubr.bf16.vlgmr.msra.gmra.mrb[0].mxu0 %v519_v11 }
  0xfa   : > { %v557_v18 = vpop.f32.mrb[0].mxu0 }
  0xfb   : > { %v558_v19 = vpop.f32.mrb[1].mxu0 }
  0xfc   : > { %v559_v21 = vadd.f32 %v558_v19, %v557_v18  ;;  %v560_v22 = vpop.f32.mrb[2].mxu0 }
  0xfd   : > { %v561_v24 = vpop.f32.mrb[3].mxu0 }
  0xfe   : > { %v418_v25 = vmul.f32 %v559_v21, %v536_v20 }
 0x100   : > { %v426_v26 = vadd.f32 %v537_v23, %v418_v25 }
 0x102   : > { %v427_v27 = vmax.f32 %v426_v26, 0.0 }
 0x104   : > { %v428_v28 = vpack.c.bf16 %v427_v27, %v427_v27 }
 0x106   : > { %430 = vst.msk [vmem:[%s229_s14] sm:$0x3] %vm429_vm0, %v428_v28 }
 0x107 PF: > { %s14_s17 = sadd.s32 1, %s625_s17   ;;  %s748_s15 = smov %s621_s16 }
 0x108   : > { %p11_p5 = scmp.ge.s32.totalorder %s14_s17, 4   ;;  %s749_s16 = smov %s751_s18 }
 0x10a   :  { %13 = sbr.rel (!%p11_p5) target bundleno = 2 (0x2), region = 66 }

// kernel: _lambda_.12
= control target key start
LH: loop header
LB: loop body
LE: loop exit
PB: predicated region body
PF: predicated region fallthrough
CT: control target
= control target key end

     0   :  { %s882_s18 = smov 0   ;;  %s884_s19 = smov 0   ;;  %s1013_s0 = inlined_call_operand.vmem [shape: bf16[2,4,384], index: 0, kind: input, shape index: {}]   ;;  %s1014_s1 = inlined_call_operand.vmem [shape: bf16[384,32], index: 1, kind: input, shape index: {}]   ;;  %s1015_s2 = inlined_call_operand.vmem [shape: f32[1,32], index: 2, kind: input, shape index: {}]   ;;  %s1016_s3 = inlined_call_operand.vmem [shape: f32[1,32], index: 3, kind: input, shape index: {}]   ;;  %s1017_s4 = inlined_call_operand.vmem [shape: f32[1,4,32], index: 4, kind: input, shape index: {}]   ;;  %s1018_s5 = inlined_call_operand.vmem [shape: bf16[2,4,32], index: 5, kind: output, shape index: {}]  }
   0x1   :  { %s886_s20 = smov 0  }
   0x2 LB: > { %s27_s21 = sadd.s32 1, %s843_s19  ;;  %p690_p0 = scmp.ge.s32.totalorder %s847_s20, 1  ;;  %s847_s20 = sphi %s886_s20, %s15_s20   ;;  %s843_s19 = sphi %s884_s19, %s1020_s19   ;;  %s839_s18 = sphi %s882_s18, %s1019_s18  }
   0x3   : > { %p29_p1 = scmp.ge.s32.totalorder %s27_s21, 2  ;;  %p216_p2 = scmp.lt.s32.totalorder %s847_s20, 3 }
   0x5   : > { %s1022_s21 = smov (%p29_p1, %s27_s21), 0  ;;  %p217_p3 = pnand %p690_p0, %p216_p2 }
   0x6   : > { %v800_v0 = vld [vmem:[%s1014_s1 + $0x40] sm:$0xff] (!%p217_p3)   ;;  %v849_v1 = vmov (!%p217_p3), 0.0   ;;  %v803_v4 = vld [vmem:[%s1014_s1 + $0x48] sm:$0xff] (!%p217_p3)   ;;  %v806_v7 = vld [vmem:[%s1014_s1 + $0x50] sm:$0xff] (!%p217_p3)   ;;  %vm850_vm0 = vmmov (!%p217_p3), 0   ;;  %p254_p4 = scmp.lt.s32.totalorder (!%p217_p3), %s839_s18, 1  ;;  %v329_v20 = vlaneseq (!%p217_p3) }
   0x7   : > { %220 = sbr.rel (%p217_p3) target bundleno = 265 (0x109), region = 40  ;;  %752 = vmatprep.subr.bf16.mxu1 (!%p217_p3), %v849_v1  ;;  %v801_v2 = vld [vmem:[%s1014_s1] sm:$0xff] (!%p217_p3)   ;;  %721 = vmatprep.subr.bf16.mxu0 (!%p217_p3), %v800_v0  ;;  %v804_v5 = vld [vmem:[%s1014_s1 + $0x8] sm:$0xff] (!%p217_p3)   ;;  %v807_v8 = vld [vmem:[%s1014_s1 + $0x10] sm:$0xff] (!%p217_p3)   ;;  %v851_v25 = vmov (!%p217_p3), 1983009808  }
   0x8   : > { %v802_v3 = vld [vmem:[%s1014_s1 + $0x80] sm:$0xff] (!%p217_p3)   ;;  %722 = vmatpush3.bf16.msra.mxu0 (!%p217_p3), %v801_v2  ;;  %v805_v6 = vld [vmem:[%s1014_s1 + $0x88] sm:$0xff] (!%p217_p3)   ;;  %768 = vmatprep.mubr.msk.bf16.mxu1 (!%p217_p3), %vm850_vm0, %v849_v1  ;;  %v808_v9 = vld [vmem:[%s1014_s1 + $0x90] sm:$0xff] (!%p217_p3)   ;;  %v327_v26 = vunpack.c.l.s4 (!%p217_p3), %v851_v25  ;;  %v330_v27 = vshrl.u32 (!%p217_p3), %v329_v20, 7  ;;  %vm587_vm1 = vcmask (!%p217_p3), 254976  }
   0x9   : > { %753 = vmatpush3.bf16.msra.mxu1 (!%p217_p3), %v802_v3  ;;  %723 = vmatprep.subr.bf16.mxu0 (!%p217_p3), %v803_v4  ;;  %v809_v10 = vld [vmem:[%s1014_s1 + $0x58] sm:$0xff] (!%p217_p3)   ;;  %v812_v13 = vld [vmem:[%s1014_s1 + $0x60] sm:$0xff] (!%p217_p3)   ;;  %v815_v16 = vld [vmem:[%s1014_s1 + $0x68] sm:$0xff] (!%p217_p3)  }
   0xa   : > { %754 = vmatprep.subr.bf16.mxu1 (!%p217_p3), %v849_v1  ;;  %v810_v11 = vld [vmem:[%s1014_s1 + $0x18] sm:$0xff] (!%p217_p3)   ;;  %v813_v14 = vld [vmem:[%s1014_s1 + $0x20] sm:$0xff] (!%p217_p3)   ;;  %v816_v17 = vld [vmem:[%s1014_s1 + $0x28] sm:$0xff] (!%p217_p3)   ;;  %v328_v30 = vunpack.c.0.s8 (!%p217_p3), %v327_v26 }
   0xb   : > { %v811_v12 = vld [vmem:[%s1014_s1 + $0x98] sm:$0xff] (!%p217_p3)   ;;  %v814_v15 = vld [vmem:[%s1014_s1 + $0xa0] sm:$0xff] (!%p217_p3)   ;;  %v817_v18 = vld [vmem:[%s1014_s1 + $0xa8] sm:$0xff] (!%p217_p3)  }
   0xc   : > { %724 = vmatpush3.bf16.msra.mxu0 (!%p217_p3), %v804_v5  ;;  %v818_v19 = vld [vmem:[%s1014_s1 + $0x70] sm:$0xff] (!%p217_p3)   ;;  %v821_v23 = vld [vmem:[%s1014_s1 + $0x78] sm:$0xff] (!%p217_p3)   ;;  %v331_v32 = vsub.s32 (!%p217_p3), %v328_v30, %v330_v27  ;;  %v717_v44 = vld [vmem:[%s1015_s2] ss:$0 sm:$0xff] (!%p217_p3) }
   0xd   : > { %755 = vmatpush3.bf16.msra.mxu1 (!%p217_p3), %v805_v6  ;;  %725 = vmatprep.subr.bf16.mxu0 (!%p217_p3), %v806_v7  ;;  %v819_v21 = vld [vmem:[%s1014_s1 + $0x30] sm:$0xff] (!%p217_p3)   ;;  %v822_v28 = vld [vmem:[%s1014_s1 + $0x38] sm:$0xff] (!%p217_p3)   ;;  %v718_v47 = vld [vmem:[%s1016_s3] ss:$0 sm:$0xff] (!%p217_p3) }
   0xe   : > { %756 = vmatprep.subr.bf16.mxu1 %v849_v1  ;;  %s1024_s18 = smov (!%p254_p4, %s839_s18), 1  ;;  %v820_v22 = vld [vmem:[%s1014_s1 + $0xb0] sm:$0xff]   ;;  %v823_v31 = vld [vmem:[%s1014_s1 + $0xb8] sm:$0xff]   ;;  %v584_v49 = vld [vmem:[%s1017_s4] sm:$0xf] }
   0xf   : > { %s772_s8 = smul.u32 6, %s1024_s18  ;;  %s692_s13 = sshll.u32 %s1024_s18, 1 }
  0x10   : > { %726 = vmatpush3.bf16.msra.mxu0 %v807_v8  ;;  %s273_s16 = scalar_lea.vmem %s1018_s5, %s692_s13 }
  0x11   : > { %757 = vmatpush3.bf16.msra.mxu1 %v808_v9  ;;  %727 = vmatprep.subr.bf16.mxu0 %v809_v10  ;;  %s262_s17 = scalar_lea.vmem %s1013_s0, %s772_s8 }
  0x12   : > { %758 = vmatprep.subr.bf16.mxu1 %v849_v1  ;;  %v275_v24 = vld [vmem:[%s262_s17] sm:$0x3f] }
  0x13   : > { %v325_v29 = vcombine.high %v275_v24, %v275_v24  ;;  %v332_v33 = vrot.slane %v275_v24, %v331_v32 }
  0x14   : > { %728 = vmatpush3.bf16.msra.mxu0 %v810_v11 }
  0x15   : > { %759 = vmatpush3.bf16.msra.mxu1 %v811_v12  ;;  %729 = vmatprep.subr.bf16.mxu0 %v812_v13  ;;  %v339_v34 = vrot.slane %v325_v29, %v331_v32  ;;  %v340_v35 = vcombine.high %v332_v33, %v332_v33 }
  0x16   : > { %760 = vmatprep.subr.bf16.mxu1 %v849_v1 }
  0x17   : > { %520 = vmatprep.mubr.bf16.mxu0 %v340_v35 }
  0x18   : > { %730 = vmatpush3.bf16.msra.mxu0 %v813_v14 }
  0x19   : > { %761 = vmatpush3.bf16.msra.mxu1 %v814_v15  ;;  %731 = vmatprep.subr.bf16.mxu0 %v815_v16 }
  0x1a   : > { %762 = vmatprep.subr.bf16.mxu1 %v849_v1 }
  0x1c   : > { %732 = vmatpush3.bf16.msra.mxu0 %v816_v17 }
  0x1d   : > { %763 = vmatpush3.bf16.msra.mxu1 %v817_v18  ;;  %733 = vmatprep.subr.bf16.mxu0 %v818_v19 }
  0x1e   : > { %764 = vmatprep.subr.bf16.mxu1 %v849_v1 }
  0x20   : > { %734 = vmatpush3.bf16.msra.mxu0 %v819_v21 }
  0x21   : > { %765 = vmatpush3.bf16.msra.mxu1 %v820_v22  ;;  %735 = vmatprep.subr.bf16.mxu0 %v821_v23 }
  0x22   : > { %766 = vmatprep.subr.bf16.mxu1 %v849_v1 }
  0x24   : > { %736 = vmatpush3.bf16.msra.mxu0 %v822_v28 }
  0x25   : > { %767 = vmatpush3.bf16.msra.mxu1 %v823_v31 }
  0x27   : > { %521 = vmatmul.mubr.bf16.vlgmr.msra.gmra.mrb[0].mxu0 %v332_v33 }
  0x28   : > { %769 = vmatmul.mubr.bf16.vlgmr.msra.gmra.mrb[0].mxu1 %v339_v34 }
  0xfa   : > { %v737_v37 = vpop.f32.mrb[0].mxu0 }
  0xfb   : > { %v562_v36 = vpop.f32.mrb[0].mxu1  ;;  %v738_v39 = vpop.f32.mrb[1].mxu0 }
  0xfc   : > { %v770_v38 = vpop.f32.mrb[1].mxu1  ;;  %v739_v41 = vadd.f32 %v738_v39, %v737_v37  ;;  %v740_v42 = vpop.f32.mrb[2].mxu0 }
  0xfd   : > { %v565_v40 = vpop.f32.mrb[2].mxu1  ;;  %v741_v45 = vpop.f32.mrb[3].mxu0 }
  0xfe   : > { %v771_v43 = vpop.f32.mrb[3].mxu1  ;;  %v563_v46 = vadd.f32 %v739_v41, %v562_v36 }
 0x100   : > { %v575_v48 = vmul.f32 %v717_v44, %v563_v46 }
 0x102   : > { %v583_v50 = vadd.f32 %v718_v47, %v575_v48 }
 0x104   : > { %v585_v51 = vadd.f32 %v584_v49, %v583_v50 }
 0x106   : > { %v586_v52 = vpack.c.bf16 %v585_v51, %v585_v51 }
 0x108   : > { %588 = vst.msk [vmem:[%s273_s16] sm:$0x3] %vm587_vm1, %v586_v52 }
 0x109 PF: > { %s15_s20 = sadd.s32 1, %s847_s20   ;;  %s1019_s18 = smov %s843_s19 }
 0x10a   : > { %p12_p5 = scmp.ge.s32.totalorder %s15_s20, 4   ;;  %s1020_s19 = smov %s1022_s21 }
 0x10c   :  { %14 = sbr.rel (!%p12_p5) target bundleno = 2 (0x2), region = 73 }

// kernel: _lambda_.13
= control target key start
LH: loop header
LB: loop body
LE: loop exit
PB: predicated region body
PF: predicated region fallthrough
CT: control target
= control target key end

     0   :  { %s750_s24 = smov 0   ;;  %s752_s25 = smov 0   ;;  %s832_s0 = inlined_call_operand.vmem [shape: bf16[2,4,32], index: 0, kind: input, shape index: {}]   ;;  %s833_s1 = inlined_call_operand.vmem [shape: bf16[32,128], index: 1, kind: input, shape index: {}]   ;;  %s834_s2 = inlined_call_operand.vmem [shape: f32[1,128], index: 2, kind: input, shape index: {}]   ;;  %s835_s3 = inlined_call_operand.vmem [shape: f32[1,128], index: 3, kind: input, shape index: {}]   ;;  %s836_s4 = inlined_call_operand.vmem [shape: bf16[128,32], index: 4, kind: input, shape index: {}]   ;;  %s837_s5 = inlined_call_operand.vmem [shape: f32[1,32], index: 5, kind: input, shape index: {}]   ;;  %s838_s6 = inlined_call_operand.vmem [shape: f32[1,32], index: 6, kind: input, shape index: {}]   ;;  %s839_s7 = inlined_call_operand.vmem [shape: bf16[2,4,32], index: 7, kind: output, shape index: {}]  }
   0x1   :  { %s754_s26 = smov 0  }
   0x2 LB: > { %s29_s27 = sadd.s32 1, %s702_s25  ;;  %p588_p0 = scmp.ge.s32.totalorder %s706_s26, 1  ;;  %s706_s26 = sphi %s754_s26, %s17_s26   ;;  %s702_s25 = sphi %s752_s25, %s841_s25   ;;  %s698_s24 = sphi %s750_s24, %s840_s24  }
   0x3   : > { %p31_p1 = scmp.ge.s32.totalorder %s29_s27, 2  ;;  %p255_p2 = scmp.lt.s32.totalorder %s706_s26, 3 }
   0x5   : > { %s843_s27 = smov (%p31_p1, %s29_s27), 0  ;;  %p256_p3 = pnand %p588_p0, %p255_p2 }
   0x6   : > { %v674_v0 = vld [vmem:[%s833_s1] sm:$0xff] (!%p256_p3)   ;;  %v708_v1 = vmov (!%p256_p3), 0.0   ;;  %v675_v2 = vld [vmem:[%s833_s1 + $0x8] sm:$0xff] (!%p256_p3)   ;;  %vm709_vm0 = vmmov (!%p256_p3), 0   ;;  %p291_p4 = scmp.lt.s32.totalorder (!%p256_p3), %s698_s24, 1  ;;  %vm323_vm1 = vcmask (!%p256_p3), 261120  }
   0x7   : > { %259 = sbr.rel (%p256_p3) target bundleno = 459 (0x1cb), region = 48  ;;  %620 = vmatprep.subr.bf16.mxu0 (!%p256_p3), %v708_v1  ;;  %628 = vmatprep.subr.bf16.mxu1 (!%p256_p3), %v708_v1  ;;  %v676_v3 = vld [vmem:[%s836_s4] sm:$0xff] (!%p256_p3)   ;;  %v677_v4 = vld [vmem:[%s836_s4 + $0x8] sm:$0xff] (!%p256_p3)   ;;  %v678_v6 = vld [vmem:[%s836_s4 + $0x10] sm:$0xff] (!%p256_p3)   ;;  %vm508_vm2 = vcmask (!%p256_p3), 254976  }
   0x8   : > { %621 = vmatpush3.bf16.msra.mxu0 (!%p256_p3), %v674_v0  ;;  %624 = vmatprep.mubr.msk.bf16.mxu0 (!%p256_p3), %vm709_vm0, %v708_v1  ;;  %v679_v7 = vld [vmem:[%s836_s4 + $0x18] sm:$0xff] (!%p256_p3)   ;;  %v680_v8 = vld [vmem:[%s836_s4 + $0x20] sm:$0xff] (!%p256_p3)   ;;  %v681_v9 = vld [vmem:[%s836_s4 + $0x28] sm:$0xff] (!%p256_p3)  }
   0x9   : > { %622 = vmatprep.subr.bf16.mxu0 (!%p256_p3), %v708_v1  ;;  %644 = vmatprep.mubr.msk.bf16.mxu1 (!%p256_p3), %vm709_vm0, %v708_v1  ;;  %v682_v10 = vld [vmem:[%s836_s4 + $0x30] sm:$0xff] (!%p256_p3)   ;;  %v683_v11 = vld [vmem:[%s836_s4 + $0x38] sm:$0xff] (!%p256_p3)   ;;  %v594_v12 = vld [vmem:[%s834_s2] ss:$0 sm:$0xff] (!%p256_p3) }
   0xa   : > { %629 = vmatpush3.bf16.msra.mxu1 (!%p256_p3), %v676_v3  ;;  %v595_v14 = vld [vmem:[%s835_s3] ss:$0 sm:$0xff] (!%p256_p3) }
   0xb   : > { %630 = vmatprep.subr.bf16.mxu1 (!%p256_p3), %v708_v1  ;;  %v604_v22 = vld [vmem:[%s837_s5] ss:$0 sm:$0xff] (!%p256_p3) }
   0xc   : > { %623 = vmatpush3.bf16.msra.mxu0 (!%p256_p3), %v675_v2  ;;  %v605_v24 = vld [vmem:[%s838_s6] ss:$0 sm:$0xff] (!%p256_p3) }
   0xe   : > { %s845_s24 = smov (!%p291_p4, %s698_s24), 1  ;;  %631 = vmatpush3.bf16.msra.mxu1 %v677_v4 }
   0xf   : > { %s589_s13 = sshll.u32 %s845_s24, 1  ;;  %632 = vmatprep.subr.bf16.mxu1 %v708_v1 }
  0x10   : > { %s297_s16 = scalar_lea.vmem %s832_s0, %s589_s13  ;;  %s304_s21 = scalar_lea.vmem %s839_s7, %s589_s13 }
  0x11   : > { %v306_v5 = vld [vmem:[%s297_s16] sm:$0x3] }
  0x12   : > { %625 = vmatmul.mubr.msk.bf16.vlgmr.msra.gmra.mrb[0].mxu0 %vm323_vm1, %v306_v5  ;;  %633 = vmatpush3.bf16.msra.mxu1 %v678_v6  ;;  %v505_v25 = vunpack.c.l.bf16 %v306_v5 }
  0x13   : > { %634 = vmatprep.subr.bf16.mxu1 %v708_v1 }
  0x16   : > { %635 = vmatpush3.bf16.msra.mxu1 %v679_v7 }
  0x17   : > { %636 = vmatprep.subr.bf16.mxu1 %v708_v1 }
  0x1a   : > { %637 = vmatpush3.bf16.msra.mxu1 %v680_v8 }
  0x1b   : > { %638 = vmatprep.subr.bf16.mxu1 %v708_v1 }
  0x1e   : > { %639 = vmatpush3.bf16.msra.mxu1 %v681_v9 }
  0x1f   : > { %640 = vmatprep.subr.bf16.mxu1 %v708_v1 }
  0x22   : > { %641 = vmatpush3.bf16.msra.mxu1 %v682_v10 }
  0x23   : > { %642 = vmatprep.subr.bf16.mxu1 %v708_v1 }
  0x26   : > { %643 = vmatpush3.bf16.msra.mxu1 %v683_v11 }
  0xe5   : > { %v361_v13 = vpop.f32.mrb[0].mxu0 }
  0xe6   : > { %v374_v15 = vmul.f32 %v594_v12, %v361_v13  ;;  %v626_v16 = vpop.f32.mrb[1].mxu0 }
  0xe7   : > { %v364_v17 = vpop.f32.mrb[2].mxu0 }
  0xe8   : > { %v382_v18 = vadd.f32 %v595_v14, %v374_v15  ;;  %v627_v19 = vpop.f32.mrb[3].mxu0 }
  0xea   : > { %v383_v20 = vmax.f32 %v382_v18, 0.0 }
  0xec   : > { %v384_v21 = vpack.c.bf16 %v383_v20, %v383_v20 }
  0xee   : > { %645 = vmatmul.mubr.bf16.vlgmr.msra.gmra.mrb[0].mxu1 %v384_v21 }
 0x1c1   : > { %v483_v23 = vpop.f32.mrb[0].mxu1 }
 0x1c2   : > { %v496_v26 = vmul.f32 %v604_v22, %v483_v23  ;;  %v646_v27 = vpop.f32.mrb[1].mxu1 }
 0x1c3   : > { %v486_v28 = vpop.f32.mrb[2].mxu1 }
 0x1c4   : > { %v504_v29 = vadd.f32 %v605_v24, %v496_v26  ;;  %v647_v30 = vpop.f32.mrb[3].mxu1 }
 0x1c6   : > { %v506_v31 = vadd.f32 %v505_v25, %v504_v29 }
 0x1c8   : > { %v507_v32 = vpack.c.bf16 %v506_v31, %v506_v31 }
 0x1ca   : > { %509 = vst.msk [vmem:[%s304_s21] sm:$0x3] %vm508_vm2, %v507_v32 }
 0x1cb PF: > { %s17_s26 = sadd.s32 1, %s706_s26   ;;  %s840_s24 = smov %s702_s25 }
 0x1cc   : > { %p14_p5 = scmp.ge.s32.totalorder %s17_s26, 4   ;;  %s841_s25 = smov %s843_s27 }
 0x1ce   :  { %16 = sbr.rel (!%p14_p5) target bundleno = 2 (0x2), region = 78 }

// kernel: _lambda_.14
= control target key start
LH: loop header
LB: loop body
LE: loop exit
PB: predicated region body
PF: predicated region fallthrough
CT: control target
= control target key end

     0   :  { %s744_s24 = smov 0   ;;  %s746_s25 = smov 0   ;;  %s826_s0 = inlined_call_operand.vmem [shape: bf16[2,4,32], index: 0, kind: input, shape index: {}]   ;;  %s827_s1 = inlined_call_operand.vmem [shape: bf16[32,128], index: 1, kind: input, shape index: {}]   ;;  %s828_s2 = inlined_call_operand.vmem [shape: f32[1,128], index: 2, kind: input, shape index: {}]   ;;  %s829_s3 = inlined_call_operand.vmem [shape: f32[1,128], index: 3, kind: input, shape index: {}]   ;;  %s830_s4 = inlined_call_operand.vmem [shape: bf16[128,32], index: 4, kind: input, shape index: {}]   ;;  %s831_s5 = inlined_call_operand.vmem [shape: f32[1,32], index: 5, kind: input, shape index: {}]   ;;  %s832_s6 = inlined_call_operand.vmem [shape: f32[1,32], index: 6, kind: input, shape index: {}]   ;;  %s833_s7 = inlined_call_operand.vmem [shape: f32[2,1,32], index: 7, kind: output, shape index: {}]  }
   0x1   :  { %s748_s26 = smov 0  }
   0x2 LB: > { %s29_s27 = sadd.s32 1, %s696_s25  ;;  %p583_p0 = scmp.ge.s32.totalorder %s700_s26, 1  ;;  %s700_s26 = sphi %s748_s26, %s17_s26   ;;  %s696_s25 = sphi %s746_s25, %s835_s25   ;;  %s692_s24 = sphi %s744_s24, %s834_s24  }
   0x3   : > { %p31_p1 = scmp.ge.s32.totalorder %s29_s27, 2  ;;  %p253_p2 = scmp.lt.s32.totalorder %s700_s26, 3 }
   0x5   : > { %s837_s27 = smov (%p31_p1, %s29_s27), 0  ;;  %p254_p3 = pnand %p583_p0, %p253_p2 }
   0x6   : > { %v668_v0 = vld [vmem:[%s827_s1] sm:$0xff] (!%p254_p3)   ;;  %v702_v1 = vmov (!%p254_p3), 0.0   ;;  %v669_v2 = vld [vmem:[%s827_s1 + $0x8] sm:$0xff] (!%p254_p3)   ;;  %vm703_vm0 = vmmov (!%p254_p3), 0   ;;  %p285_p4 = scmp.lt.s32.totalorder (!%p254_p3), %s692_s24, 1  ;;  %vm319_vm1 = vcmask (!%p254_p3), 261120  }
   0x7   : > { %257 = sbr.rel (%p254_p3) target bundleno = 482 (0x1e2), region = 48  ;;  %614 = vmatprep.subr.bf16.mxu0 (!%p254_p3), %v702_v1  ;;  %622 = vmatprep.subr.bf16.mxu1 (!%p254_p3), %v702_v1  ;;  %v670_v3 = vld [vmem:[%s830_s4] sm:$0xff] (!%p254_p3)   ;;  %v671_v4 = vld [vmem:[%s830_s4 + $0x8] sm:$0xff] (!%p254_p3)   ;;  %v672_v6 = vld [vmem:[%s830_s4 + $0x10] sm:$0xff] (!%p254_p3)   ;;  %vm300_vm2 = vcmask (!%p254_p3), 253952   ;;  %vm504_vm3 = vcmask (!%p254_p3), 257024  }
   0x8   : > { %615 = vmatpush3.bf16.msra.mxu0 (!%p254_p3), %v668_v0  ;;  %618 = vmatprep.mubr.msk.bf16.mxu0 (!%p254_p3), %vm703_vm0, %v702_v1  ;;  %v673_v7 = vld [vmem:[%s830_s4 + $0x18] sm:$0xff] (!%p254_p3)   ;;  %v674_v8 = vld [vmem:[%s830_s4 + $0x20] sm:$0xff] (!%p254_p3)   ;;  %v675_v9 = vld [vmem:[%s830_s4 + $0x28] sm:$0xff] (!%p254_p3)   ;;  %301 = vst.msk [vmem:[#allocation2] sm:$0x1] (!%p254_p3), %vm300_vm2, %v702_v1 }
   0x9   : > { %616 = vmatprep.subr.bf16.mxu0 (!%p254_p3), %v702_v1  ;;  %638 = vmatprep.mubr.msk.bf16.mxu1 (!%p254_p3), %vm703_vm0, %v702_v1  ;;  %v676_v10 = vld [vmem:[%s830_s4 + $0x30] sm:$0xff] (!%p254_p3)   ;;  %v677_v11 = vld [vmem:[%s830_s4 + $0x38] sm:$0xff] (!%p254_p3)   ;;  %v588_v12 = vld [vmem:[%s828_s2] ss:$0 sm:$0xff] (!%p254_p3) }
   0xa   : > { %623 = vmatpush3.bf16.msra.mxu1 (!%p254_p3), %v670_v3  ;;  %v589_v14 = vld [vmem:[%s829_s3] ss:$0 sm:$0xff] (!%p254_p3) }
   0xb   : > { %624 = vmatprep.subr.bf16.mxu1 (!%p254_p3), %v702_v1  ;;  %v598_v22 = vld [vmem:[%s831_s5] ss:$0 sm:$0xff] (!%p254_p3) }
   0xc   : > { %617 = vmatpush3.bf16.msra.mxu0 (!%p254_p3), %v669_v2  ;;  %v599_v24 = vld [vmem:[%s832_s6] ss:$0 sm:$0xff] (!%p254_p3) }
   0xe   : > { %s839_s24 = smov (!%p285_p4, %s692_s24), 1  ;;  %625 = vmatpush3.bf16.msra.mxu1 %v671_v4 }
   0xf   : > { %s584_s13 = sshll.u32 %s839_s24, 1  ;;  %626 = vmatprep.subr.bf16.mxu1 %v702_v1  ;;  %v503_v38 = vld [vmem:[#allocation2] sm:$0x1]  ;;  %s294_s20 = scalar_lea.vmem %s833_s7, %s839_s24 }
  0x10   : > { %s291_s16 = scalar_lea.vmem %s826_s0, %s584_s13 }
  0x11   : > { %v302_v5 = vld [vmem:[%s291_s16] sm:$0x3] }
  0x12   : > { %619 = vmatmul.mubr.msk.bf16.vlgmr.msra.gmra.mrb[0].mxu0 %vm319_vm1, %v302_v5  ;;  %627 = vmatpush3.bf16.msra.mxu1 %v672_v6  ;;  %v501_v25 = vunpack.c.l.bf16 %v302_v5 }
  0x13   : > { %628 = vmatprep.subr.bf16.mxu1 %v702_v1 }
  0x16   : > { %629 = vmatpush3.bf16.msra.mxu1 %v673_v7 }
  0x17   : > { %630 = vmatprep.subr.bf16.mxu1 %v702_v1 }
  0x1a   : > { %631 = vmatpush3.bf16.msra.mxu1 %v674_v8 }
  0x1b   : > { %632 = vmatprep.subr.bf16.mxu1 %v702_v1 }
  0x1e   : > { %633 = vmatpush3.bf16.msra.mxu1 %v675_v9 }
  0x1f   : > { %634 = vmatprep.subr.bf16.mxu1 %v702_v1 }
  0x22   : > { %635 = vmatpush3.bf16.msra.mxu1 %v676_v10 }
  0x23   : > { %636 = vmatprep.subr.bf16.mxu1 %v702_v1 }
  0x26   : > { %637 = vmatpush3.bf16.msra.mxu1 %v677_v11 }
  0xe5   : > { %v357_v13 = vpop.f32.mrb[0].mxu0 }
  0xe6   : > { %v370_v15 = vmul.f32 %v588_v12, %v357_v13  ;;  %v620_v16 = vpop.f32.mrb[1].mxu0 }
  0xe7   : > { %v360_v17 = vpop.f32.mrb[2].mxu0 }
  0xe8   : > { %v378_v18 = vadd.f32 %v589_v14, %v370_v15  ;;  %v621_v19 = vpop.f32.mrb[3].mxu0 }
  0xea   : > { %v379_v20 = vmax.f32 %v378_v18, 0.0 }
  0xec   : > { %v380_v21 = vpack.c.bf16 %v379_v20, %v379_v20 }
  0xee   : > { %639 = vmatmul.mubr.bf16.vlgmr.msra.gmra.mrb[0].mxu1 %v380_v21 }
 0x1c1   : > { %v479_v23 = vpop.f32.mrb[0].mxu1 }
 0x1c2   : > { %v492_v26 = vmul.f32 %v598_v22, %v479_v23  ;;  %v640_v27 = vpop.f32.mrb[1].mxu1 }
 0x1c3   : > { %v482_v28 = vpop.f32.mrb[2].mxu1 }
 0x1c4   : > { %v500_v29 = vadd.f32 %v599_v24, %v492_v26  ;;  %v641_v30 = vpop.f32.mrb[3].mxu1 }
 0x1c6   : > { %v502_v31 = vadd.f32 %v501_v25, %v500_v29 }
 0x1c8   : > { %v505_v32 = vsel %vm504_vm3, %v502_v31, 0.0 }
 0x1c9   : > { %v506_v33 = vrot.slane %v505_v32, 4 }
 0x1cb   : > { %v507_v34 = vadd.f32 %v506_v33, %v505_v32 }
 0x1cd   : > { %v508_v35 = vrot.slane %v507_v34, 2 }
 0x1cf   : > { %v509_v36 = vadd.f32 %v508_v35, %v507_v34 }
 0x1d1   : > { %v510_v37 = vrot.slane %v509_v36, 1 }
 0x1d3   : > { %v511_v39 = vadd.f32 %v510_v37, %v509_v36 }
 0x1d5   : > { %v512_v40 = vadd.f32 %v511_v39, %v503_v38 }
 0x1d7   : > { %514 = vst.msk [vmem:[#allocation2] sm:$0x1] %vm300_vm2, %v512_v40 }
 0x1de   : > { %v518_v41 = vld [vmem:[#allocation2] sm:$0x1] }
 0x1df   : > { %v519_v42 = vmul.f32 0.25, %v518_v41 }
 0x1e1   : > { %520 = vst.msk [vmem:[%s294_s20] sm:$0x1] %vm300_vm2, %v519_v42 }
 0x1e2 PF: > { %s17_s26 = sadd.s32 1, %s700_s26   ;;  %s834_s24 = smov %s696_s25 }
 0x1e3   : > { %p14_p5 = scmp.ge.s32.totalorder %s17_s26, 4   ;;  %s835_s25 = smov %s837_s27 }
 0x1e5   :  { %16 = sbr.rel (!%p14_p5) target bundleno = 2 (0x2), region = 86 }

// kernel: _lambda_.15
= control target key start
LH: loop header
LB: loop body
LE: loop exit
PB: predicated region body
PF: predicated region fallthrough
CT: control target
= control target key end

     0   :  { %v1327_v3 = vmov 0   ;;  %vm121_vm0 = vcmask 261120   ;;  %s1655_s1 = inlined_call_operand.vmem [shape: bf16[32,1024], index: 1, kind: input, shape index: {}]   ;;  %s1656_s4 = inlined_call_operand.vmem [shape: bf16[1024,128], index: 4, kind: input, shape index: {}]   ;;  %s1657_s0 = inlined_call_operand.vmem [shape: bf16[8,32], index: 0, kind: input, shape index: {}]   ;;  %s1658_s2 = inlined_call_operand.vmem [shape: f32[1,1024], index: 2, kind: input, shape index: {}]   ;;  %s1659_s3 = inlined_call_operand.vmem [shape: f32[1,1024], index: 3, kind: input, shape index: {}]   ;;  %s1660_s5 = inlined_call_operand.vmem [shape: f32[1,128], index: 5, kind: input, shape index: {}]   ;;  %s1661_s6 = inlined_call_operand.vmem [shape: f32[8,128], index: 6, kind: output, shape index: {}]  }
   0x1   :  { %v25_v0 = vld [vmem:[%s1655_s1] sm:$0xff]  ;;  %v26_v2 = vld [vmem:[%s1655_s1 + $0x8] sm:$0xff]  ;;  %157 = vmatprep.mubr.bf16.mxu0 %v1327_v3  ;;  %198 = vmatprep.mubr.bf16.mxu1 %v1327_v3  ;;  %v27_v15 = vld [vmem:[%s1655_s1 + $0x10] sm:$0xff] }
   0x2   :  { %v29_v1 = vld [vmem:[%s1655_s1 + $0x20] sm:$0xff]  ;;  %v30_v5 = vld [vmem:[%s1655_s1 + $0x28] sm:$0xff]  ;;  %v31_v16 = vld [vmem:[%s1655_s1 + $0x30] sm:$0xff] }
   0x3   :  { %v1090_v4 = vcombine.high %v25_v0, %v29_v1  ;;  %v1089_v6 = vcombine.low %v25_v0, %v29_v1  ;;  %v33_v7 = vld [vmem:[%s1655_s1 + $0x40] sm:$0xff]  ;;  %v1092_v9 = vcombine.high %v26_v2, %v30_v5  ;;  %v1091_v10 = vcombine.low %v26_v2, %v30_v5  ;;  %v34_v12 = vld [vmem:[%s1655_s1 + $0x48] sm:$0xff]  ;;  %v28_v17 = vld [vmem:[%s1655_s1 + $0x18] sm:$0xff] }
   0x4   :  { %v37_v8 = vld [vmem:[%s1655_s1 + $0x60] sm:$0xff]  ;;  %v38_v13 = vld [vmem:[%s1655_s1 + $0x68] sm:$0xff]  ;;  %v32_v19 = vld [vmem:[%s1655_s1 + $0x38] sm:$0xff]  ;;  %v1094_v21 = vcombine.high %v27_v15, %v31_v16  ;;  %v1093_v28 = vcombine.low %v27_v15, %v31_v16 }
   0x5   :  { %v1098_v11 = vcombine.high %v33_v7, %v37_v8  ;;  %125 = vmatprep.subr.bf16.mxu0 %v1090_v4  ;;  %v1100_v14 = vcombine.high %v34_v12, %v38_v13  ;;  %166 = vmatprep.subr.bf16.mxu1 %v1092_v9  ;;  %v1097_v18 = vcombine.low %v33_v7, %v37_v8  ;;  %v35_v22 = vld [vmem:[%s1655_s1 + $0x50] sm:$0xff]  ;;  %v36_v25 = vld [vmem:[%s1655_s1 + $0x58] sm:$0xff]  ;;  %v24_v27 = vld [vmem:[%s1657_s0] sm:$0xf]  ;;  %v291_v4 = vlaneseq }
   0x6   :  { %126 = vmatpush1.bf16.msra.mxu0 %v1089_v6  ;;  %167 = vmatpush1.bf16.msra.mxu1 %v1091_v10  ;;  %v1099_v20 = vcombine.low %v34_v12, %v38_v13  ;;  %v39_v23 = vld [vmem:[%s1655_s1 + $0x70] sm:$0xff]  ;;  %v1096_v24 = vcombine.high %v28_v17, %v32_v19  ;;  %v40_v26 = vld [vmem:[%s1655_s1 + $0x78] sm:$0xff]  ;;  %v1095_v29 = vcombine.low %v28_v17, %v32_v19  ;;  %v1263_v33 = vld [vmem:[%s1656_s4 + $0x40] sm:$0xff]  }
   0x7   :  { %127 = vmatprep.subr.bf16.mxu0 %v1098_v11  ;;  %168 = vmatprep.subr.bf16.mxu1 %v1100_v14  ;;  %v1102_v30 = vcombine.high %v35_v22, %v39_v23  ;;  %v1104_v31 = vcombine.high %v36_v25, %v40_v26  ;;  %v1101_v32 = vcombine.low %v35_v22, %v39_v23  ;;  %v1264_v35 = vld [vmem:[%s1656_s4 + $0xc0] sm:$0xff]   ;;  %v1267_v38 = vld [vmem:[%s1656_s4 + $0x48] sm:$0xff]   ;;  %v1271_v42 = vld [vmem:[%s1656_s4 + $0x50] sm:$0xff]   ;;  %v1520_v5 = vshrl.u32 %v291_v4, 7 }
   0x8   :  { %v1103_v34 = vcombine.low %v36_v25, %v40_v26  ;;  %v1265_v36 = vld [vmem:[%s1656_s4] sm:$0xff]   ;;  %v1268_v39 = vld [vmem:[%s1656_s4 + $0xc8] sm:$0xff]   ;;  %v1272_v43 = vld [vmem:[%s1656_s4 + $0xd0] sm:$0xff]  }
   0x9   :  { %v1266_v37 = vld [vmem:[%s1656_s4 + $0x80] sm:$0xff]   ;;  %v1269_v40 = vld [vmem:[%s1656_s4 + $0x8] sm:$0xff]   ;;  %v1273_v44 = vld [vmem:[%s1656_s4 + $0x10] sm:$0xff]   ;;  %v293_v6 = vsub.s32 0, %v1520_v5  ;;  %v301_v8 = vsub.s32 2, %v1520_v5  ;;  %v297_v9 = vsub.s32 1, %v1520_v5 }
   0xa   :  { %128 = vmatpush1.bf16.msra.mxu0 %v1097_v18  ;;  %169 = vmatpush1.bf16.msra.mxu1 %v1099_v20  ;;  %v1270_v41 = vld [vmem:[%s1656_s4 + $0x88] sm:$0xff]   ;;  %v1274_v45 = vld [vmem:[%s1656_s4 + $0x90] sm:$0xff]   ;;  %v1275_v46 = vld [vmem:[%s1656_s4 + $0x58] sm:$0xff]   ;;  %v305_v10 = vsub.s32 3, %v1520_v5 }
   0xb   :  { %207 = vmatprep.subr.bf16.mxu0 %v1094_v21  ;;  %248 = vmatprep.subr.bf16.mxu1 %v1096_v24  ;;  %v1276_v47 = vld [vmem:[%s1656_s4 + $0xd8] sm:$0xff]   ;;  %v1279_v50 = vld [vmem:[%s1656_s4 + $0x60] sm:$0xff]   ;;  %v1283_v54 = vld [vmem:[%s1656_s4 + $0x68] sm:$0xff]  }
   0xc   :  { %v1277_v48 = vld [vmem:[%s1656_s4 + $0x18] sm:$0xff]   ;;  %v1280_v51 = vld [vmem:[%s1656_s4 + $0xe0] sm:$0xff]   ;;  %v1284_v55 = vld [vmem:[%s1656_s4 + $0xe8] sm:$0xff]  }
   0xd   :  { %1105 = vmatmul.mubr.msk.bf16.vlgmr.msra.gmra.mrb[0].mxu0 %vm121_vm0, %v24_v27  ;;  %1106 = vmatmul.mubr.msk.bf16.vlgmr.msra.gmra.mrb[0].mxu1 %vm121_vm0, %v24_v27  ;;  %v1278_v49 = vld [vmem:[%s1656_s4 + $0x98] sm:$0xff]   ;;  %v1281_v52 = vld [vmem:[%s1656_s4 + $0x20] sm:$0xff]   ;;  %v1285_v56 = vld [vmem:[%s1656_s4 + $0x28] sm:$0xff]  }
   0xe   :  { %208 = vmatpush1.bf16.msra.mxu0 %v1093_v28  ;;  %249 = vmatpush1.bf16.msra.mxu1 %v1095_v29  ;;  %v1282_v53 = vld [vmem:[%s1656_s4 + $0xa0] sm:$0xff]   ;;  %v1286_v57 = vld [vmem:[%s1656_s4 + $0xa8] sm:$0xff]   ;;  %v1287_v58 = vld [vmem:[%s1656_s4 + $0x70] sm:$0xff]   ;;  %v313_v28 = vsub.s32 5, %v1520_v5 }
   0xf   :  { %209 = vmatprep.subr.bf16.mxu0 %v1102_v30  ;;  %250 = vmatprep.subr.bf16.mxu1 %v1104_v31  ;;  %v1288_v59 = vld [vmem:[%s1656_s4 + $0xf0] sm:$0xff]   ;;  %v1291_v62 = vld [vmem:[%s1656_s4 + $0x78] sm:$0xff]   ;;  %v1295_v2 = vld [vmem:[%s1656_s4 + $0x140] sm:$0xff]  }
  0x10   :  { %239 = vmatprep.mubr.bf16.mxu0 %v1327_v3  ;;  %280 = vmatprep.mubr.bf16.mxu1 %v1327_v3  ;;  %v1289_v60 = vld [vmem:[%s1656_s4 + $0x30] sm:$0xff]   ;;  %v1292_v63 = vld [vmem:[%s1656_s4 + $0xf8] sm:$0xff]   ;;  %v1296_v3 = vld [vmem:[%s1656_s4 + $0x1c0] sm:$0xff]  }
  0x11   :  { %v1290_v61 = vld [vmem:[%s1656_s4 + $0xb0] sm:$0xff]   ;;  %v1293_v0 = vld [vmem:[%s1656_s4 + $0x38] sm:$0xff]   ;;  %v1526_v7 = vld [vmem:[%s1658_s2] sm:$0xff] }
  0x12   :  { %210 = vmatpush1.bf16.msra.mxu0 %v1101_v32  ;;  %251 = vmatpush1.bf16.msra.mxu1 %v1103_v34  ;;  %v1294_v1 = vld [vmem:[%s1656_s4 + $0xb8] sm:$0xff]   ;;  %v1534_v11 = vld [vmem:[%s1659_s3] sm:$0xff]  ;;  %v294_v12 = vrot.slane %v1526_v7, %v293_v6  ;;  %v302_v13 = vrot.slane %v1526_v7, %v301_v8  ;;  %v298_v14 = vrot.slane %v1526_v7, %v297_v9 }
  0x13   :  { %1174 = vmatprep.subr.bf16.mxu0 %v1263_v33  ;;  %1196 = vmatprep.subr.bf16.mxu1 %v1264_v35  ;;  %v344_v15 = vrot.slane %v1534_v11, %v293_v6  ;;  %v306_v16 = vrot.slane %v1526_v7, %v305_v10  ;;  %v352_v18 = vrot.slane %v1534_v11, %v301_v8  ;;  %v321_v33 = vsub.s32 7, %v1520_v5  ;;  %v1304_v6 = vld [vmem:[%s1656_s4 + $0x1d0] sm:$0xff]  }
  0x14   :  { %v348_v19 = vrot.slane %v1534_v11, %v297_v9  ;;  %v356_v23 = vrot.slane %v1534_v11, %v305_v10  ;;  %v1305_v10 = vld [vmem:[%s1656_s4 + $0x110] sm:$0xff]  }
  0x15   :  { %1107 = vmatmul.mubr.msk.bf16.vlgmr.msra.gmra.mrb[4].mxu0 %vm121_vm0, %v24_v27  ;;  %1108 = vmatmul.mubr.msk.bf16.vlgmr.msra.gmra.mrb[4].mxu1 %vm121_vm0, %v24_v27 }
  0x16   :  { %1175 = vmatpush3.bf16.msra.mxu0 %v1265_v36  ;;  %1197 = vmatpush3.bf16.msra.mxu1 %v1266_v37 }
  0x17   :  { %1176 = vmatprep.subr.bf16.mxu0 %v1267_v38  ;;  %1198 = vmatprep.subr.bf16.mxu1 %v1268_v39 }
  0x1a   :  { %1177 = vmatpush3.bf16.msra.mxu0 %v1269_v40  ;;  %1199 = vmatpush3.bf16.msra.mxu1 %v1270_v41  ;;  %v314_v41 = vrot.slane %v1526_v7, %v313_v28 }
  0x1b   :  { %1178 = vmatprep.subr.bf16.mxu0 %v1271_v42  ;;  %1200 = vmatprep.subr.bf16.mxu1 %v1272_v43  ;;  %v322_v43 = vrot.slane %v1526_v7, %v321_v33 }
  0x1e   :  { %1179 = vmatpush3.bf16.msra.mxu0 %v1273_v44  ;;  %1201 = vmatpush3.bf16.msra.mxu1 %v1274_v45 }
  0x1f   :  { %1180 = vmatprep.subr.bf16.mxu0 %v1275_v46  ;;  %1202 = vmatprep.subr.bf16.mxu1 %v1276_v47  ;;  %v1297_v46 = vld [vmem:[%s1656_s4 + $0x100] sm:$0xff]  }
  0x22   :  { %1181 = vmatpush3.bf16.msra.mxu0 %v1277_v48  ;;  %1203 = vmatpush3.bf16.msra.mxu1 %v1278_v49  ;;  %v364_v48 = vrot.slane %v1534_v11, %v313_v28 }
  0x23   :  { %1182 = vmatprep.subr.bf16.mxu0 %v1279_v50  ;;  %1204 = vmatprep.subr.bf16.mxu1 %v1280_v51  ;;  %v1298_v51 = vld [vmem:[%s1656_s4 + $0x180] sm:$0xff]  }
  0x26   :  { %1183 = vmatpush3.bf16.msra.mxu0 %v1281_v52  ;;  %1205 = vmatpush3.bf16.msra.mxu1 %v1282_v53  ;;  %v1299_v52 = vld [vmem:[%s1656_s4 + $0x148] sm:$0xff]  }
  0x27   :  { %1184 = vmatprep.subr.bf16.mxu0 %v1283_v54  ;;  %1206 = vmatprep.subr.bf16.mxu1 %v1284_v55  ;;  %v372_v55 = vrot.slane %v1534_v11, %v321_v33  ;;  %v1319_v33 = vld [vmem:[%s1656_s4 + $0x170] sm:$0xff]  }
  0x2a   :  { %1185 = vmatpush3.bf16.msra.mxu0 %v1285_v56  ;;  %1207 = vmatpush3.bf16.msra.mxu1 %v1286_v57  ;;  %v1300_v56 = vld [vmem:[%s1656_s4 + $0x1c8] sm:$0xff]  }
  0x2b   :  { %1186 = vmatprep.subr.bf16.mxu0 %v1287_v58  ;;  %1208 = vmatprep.subr.bf16.mxu1 %v1288_v59 }
  0x2e   :  { %1187 = vmatpush3.bf16.msra.mxu0 %v1289_v60  ;;  %1209 = vmatpush3.bf16.msra.mxu1 %v1290_v61 }
  0x2f   :  { %1188 = vmatprep.subr.bf16.mxu0 %v1291_v62  ;;  %1210 = vmatprep.subr.bf16.mxu1 %v1292_v63  ;;  %v1301_v63 = vld [vmem:[%s1656_s4 + $0x108] sm:$0xff]  }
  0x32   :  { %1189 = vmatpush3.bf16.msra.mxu0 %v1293_v0  ;;  %1211 = vmatpush3.bf16.msra.mxu1 %v1294_v1 }
  0x33   :  { %1218 = vmatprep.subr.bf16.mxu0 %v1295_v2  ;;  %1240 = vmatprep.subr.bf16.mxu1 %v1296_v3  ;;  %v1302_v2 = vld [vmem:[%s1656_s4 + $0x188] sm:$0xff]   ;;  %v1303_v3 = vld [vmem:[%s1656_s4 + $0x150] sm:$0xff]  }
  0xe0   :  { %v159_v17 = vpop.f32.mrb[0].mxu0  ;;  %v200_v21 = vpop.f32.mrb[0].mxu1 }
  0xe1   :  { %v331_v20 = vmul.f32 %v294_v12, %v159_v17  ;;  %v161_v22 = vpop.f32.mrb[1].mxu0  ;;  %v333_v24 = vmul.f32 %v302_v13, %v200_v21  ;;  %v202_v26 = vpop.f32.mrb[1].mxu1  ;;  %v1306_v13 = vld [vmem:[%s1656_s4 + $0x190] sm:$0xff]   ;;  %v1309_v17 = vld [vmem:[%s1656_s4 + $0x118] sm:$0xff]   ;;  %v309_v21 = vsub.s32 4, %v1520_v5 }
  0xe2   :  { %v332_v25 = vmul.f32 %v298_v14, %v161_v22  ;;  %v163_v27 = vpop.f32.mrb[2].mxu0  ;;  %v334_v30 = vmul.f32 %v306_v16, %v202_v26  ;;  %v204_v31 = vpop.f32.mrb[2].mxu1  ;;  %v1307_v14 = vld [vmem:[%s1656_s4 + $0x158] sm:$0xff]   ;;  %v1312_v22 = vld [vmem:[%s1656_s4 + $0x1e0] sm:$0xff]   ;;  %v1315_v26 = vld [vmem:[%s1656_s4 + $0x168] sm:$0xff]  }
  0xe3   :  { %v381_v29 = vadd.f32 %v344_v15, %v331_v20  ;;  %v164_v32 = vpop.f32.mrb[3].mxu0  ;;  %v383_v34 = vadd.f32 %v352_v18, %v333_v24  ;;  %v205_v36 = vpop.f32.mrb[3].mxu1  ;;  %v1308_v16 = vld [vmem:[%s1656_s4 + $0x1d8] sm:$0xff]   ;;  %v317_v18 = vsub.s32 6, %v1520_v5  ;;  %v1311_v20 = vld [vmem:[%s1656_s4 + $0x160] sm:$0xff]   ;;  %v310_v5 = vrot.slane %v1526_v7, %v309_v21  ;;  %v1316_v27 = vld [vmem:[%s1656_s4 + $0x1e8] sm:$0xff]  }
  0xe4   :  { %v382_v35 = vadd.f32 %v348_v19, %v332_v25  ;;  %v384_v38 = vadd.f32 %v356_v23, %v334_v30  ;;  %v1310_v19 = vld [vmem:[%s1656_s4 + $0x198] sm:$0xff]   ;;  %v1313_v23 = vld [vmem:[%s1656_s4 + $0x120] sm:$0xff]   ;;  %v1317_v30 = vld [vmem:[%s1656_s4 + $0x128] sm:$0xff]   ;;  %v360_v31 = vrot.slane %v1534_v11, %v309_v21 }
  0xe5   :  { %v389_v37 = vmax.f32 %v381_v29, 0.0  ;;  %v391_v39 = vmax.f32 %v383_v34, 0.0  ;;  %v318_v24 = vrot.slane %v1526_v7, %v317_v18  ;;  %v1314_v25 = vld [vmem:[%s1656_s4 + $0x1a0] sm:$0xff]   ;;  %v368_v29 = vrot.slane %v1534_v11, %v317_v18  ;;  %v1318_v32 = vld [vmem:[%s1656_s4 + $0x1a8] sm:$0xff]   ;;  %v1320_v34 = vld [vmem:[%s1656_s4 + $0x1f0] sm:$0xff]  }
  0xe6   :  { %v390_v40 = vmax.f32 %v382_v35, 0.0  ;;  %v392_v42 = vmax.f32 %v384_v38, 0.0  ;;  %v1321_v11 = vld [vmem:[%s1656_s4 + $0x130] sm:$0xff]   ;;  %v1323_v38 = vld [vmem:[%s1656_s4 + $0x178] sm:$0xff]  }
  0xe7   :  { %v399_v44 = vpack.c.bf16 %v391_v39, %v391_v39  ;;  %v397_v49 = vpack.c.bf16 %v389_v37, %v389_v37  ;;  %v1322_v37 = vld [vmem:[%s1656_s4 + $0x1b0] sm:$0xff]   ;;  %v1324_v39 = vld [vmem:[%s1656_s4 + $0x1f8] sm:$0xff]  }
  0xe8   :  { %v398_v45 = vpack.c.bf16 %v390_v40, %v390_v40  ;;  %v1551_v47 = vpop.f32.mrb[4].mxu0  ;;  %v400_v50 = vpack.c.bf16 %v392_v42, %v392_v42  ;;  %v282_v54 = vpop.f32.mrb[4].mxu1 }
  0xe9   :  { %v243_v53 = vpop.f32.mrb[5].mxu0  ;;  %v284_v59 = vpop.f32.mrb[5].mxu1  ;;  %v337_v28 = vmul.f32 %v318_v24, %v282_v54  ;;  %v335_v7 = vmul.f32 %v310_v5, %v1551_v47 }
  0xea   :  { %956 = vmatprep.mubr.bf16.mxu0 %v398_v45  ;;  %v336_v57 = vmul.f32 %v314_v41, %v243_v53  ;;  %v245_v58 = vpop.f32.mrb[6].mxu0  ;;  %996 = vmatprep.mubr.bf16.mxu1 %v400_v50  ;;  %v338_v61 = vmul.f32 %v322_v43, %v284_v59  ;;  %v286_v62 = vpop.f32.mrb[6].mxu1  ;;  %v1325_v41 = vld [vmem:[%s1656_s4 + $0x138] sm:$0xff]  }
  0xeb   :  { %957 = vmatmul.mubr.bf16.vlgmr.msra.gmra.mrb[8].mxu0 %v397_v49  ;;  %v246_v60 = vpop.f32.mrb[7].mxu0  ;;  %997 = vmatmul.mubr.bf16.vlgmr.msra.gmra.mrb[8].mxu1 %v399_v44  ;;  %v287_v1 = vpop.f32.mrb[7].mxu1  ;;  %v387_v35 = vadd.f32 %v368_v29, %v337_v28  ;;  %v385_v36 = vadd.f32 %v360_v31, %v335_v7  ;;  %v1326_v43 = vld [vmem:[%s1656_s4 + $0x1b8] sm:$0xff]  }
  0xec   :  { %1219 = vmatpush3.bf16.msra.mxu0 %v1297_v46  ;;  %v386_v0 = vadd.f32 %v364_v48, %v336_v57  ;;  %1241 = vmatpush3.bf16.msra.mxu1 %v1298_v51  ;;  %v388_v4 = vadd.f32 %v372_v55, %v338_v61  ;;  %v1109_v48 = vld [vmem:[%s1660_s5] ss:$0 sm:$0xff] }
  0xed   :  { %1220 = vmatprep.subr.bf16.mxu0 %v1299_v52  ;;  %1242 = vmatprep.subr.bf16.mxu1 %v1300_v56  ;;  %v395_v40 = vmax.f32 %v387_v35, 0.0  ;;  %v393_v42 = vmax.f32 %v385_v36, 0.0 }
  0xee   :  { %v394_v8 = vmax.f32 %v386_v0, 0.0  ;;  %v396_v9 = vmax.f32 %v388_v4, 0.0 }
  0xef   :  { %v403_v44 = vpack.c.bf16 %v395_v40, %v395_v40  ;;  %v401_v45 = vpack.c.bf16 %v393_v42, %v393_v42 }
  0xf0   :  { %1221 = vmatpush3.bf16.msra.mxu0 %v1301_v63  ;;  %v402_v12 = vpack.c.bf16 %v394_v8, %v394_v8  ;;  %1243 = vmatpush3.bf16.msra.mxu1 %v1302_v2  ;;  %v404_v15 = vpack.c.bf16 %v396_v9, %v396_v9 }
  0xf1   :  { %1222 = vmatprep.subr.bf16.mxu0 %v1303_v3  ;;  %1244 = vmatprep.subr.bf16.mxu1 %v1304_v6 }
  0xf2   :  { %1036 = vmatprep.mubr.bf16.mxu0 %v402_v12  ;;  %1076 = vmatprep.mubr.bf16.mxu1 %v404_v15 }
  0xf4   :  { %1223 = vmatpush3.bf16.msra.mxu0 %v1305_v10  ;;  %1245 = vmatpush3.bf16.msra.mxu1 %v1306_v13 }
  0xf5   :  { %1224 = vmatprep.subr.bf16.mxu0 %v1307_v14  ;;  %1246 = vmatprep.subr.bf16.mxu1 %v1308_v16 }
  0xf8   :  { %1225 = vmatpush3.bf16.msra.mxu0 %v1309_v17  ;;  %1247 = vmatpush3.bf16.msra.mxu1 %v1310_v19 }
  0xf9   :  { %1226 = vmatprep.subr.bf16.mxu0 %v1311_v20  ;;  %1248 = vmatprep.subr.bf16.mxu1 %v1312_v22 }
  0xfc   :  { %1227 = vmatpush3.bf16.msra.mxu0 %v1313_v23  ;;  %1249 = vmatpush3.bf16.msra.mxu1 %v1314_v25 }
  0xfd   :  { %1228 = vmatprep.subr.bf16.mxu0 %v1315_v26  ;;  %1250 = vmatprep.subr.bf16.mxu1 %v1316_v27 }
 0x100   :  { %1229 = vmatpush3.bf16.msra.mxu0 %v1317_v30  ;;  %1251 = vmatpush3.bf16.msra.mxu1 %v1318_v32 }
 0x101   :  { %1230 = vmatprep.subr.bf16.mxu0 %v1319_v33  ;;  %1252 = vmatprep.subr.bf16.mxu1 %v1320_v34 }
 0x104   :  { %1231 = vmatpush3.bf16.msra.mxu0 %v1321_v11  ;;  %1253 = vmatpush3.bf16.msra.mxu1 %v1322_v37 }
 0x105   :  { %1232 = vmatprep.subr.bf16.mxu0 %v1323_v38  ;;  %1254 = vmatprep.subr.bf16.mxu1 %v1324_v39 }
 0x108   :  { %1233 = vmatpush3.bf16.msra.mxu0 %v1325_v41  ;;  %1255 = vmatpush3.bf16.msra.mxu1 %v1326_v43 }
 0x10b   :  { %1037 = vmatmul.mubr.bf16.vlgmr.msra.gmra.mrb[12].mxu0 %v401_v45  ;;  %1077 = vmatmul.mubr.bf16.vlgmr.msra.gmra.mrb[12].mxu1 %v403_v44 }
 0x1be   :  { %v1190_v46 = vpop.f32.mrb[8].mxu0  ;;  %v1212_v47 = vpop.f32.mrb[8].mxu1 }
 0x1bf   :  { %v1191_v49 = vpop.f32.mrb[9].mxu0  ;;  %v1213_v51 = vpop.f32.mrb[9].mxu1 }
 0x1c0   :  { %v1192_v50 = vadd.f32 %v1191_v49, %v1190_v46  ;;  %v1193_v52 = vpop.f32.mrb[10].mxu0  ;;  %v1214_v53 = vadd.f32 %v1213_v51, %v1212_v47  ;;  %v1215_v54 = vpop.f32.mrb[10].mxu1 }
 0x1c1   :  { %v1194_v55 = vpop.f32.mrb[11].mxu0  ;;  %v1216_v57 = vpop.f32.mrb[11].mxu1 }
 0x1c2   :  { %v959_v56 = vadd.f32 %v1192_v50, %v1109_v48 }
 0x1c4   :  { %v999_v58 = vadd.f32 %v1214_v53, %v959_v56 }
 0x1de   :  { %v1234_v59 = vpop.f32.mrb[12].mxu0  ;;  %v1256_v60 = vpop.f32.mrb[12].mxu1 }
 0x1df   :  { %v1235_v61 = vpop.f32.mrb[13].mxu0  ;;  %v1257_v63 = vpop.f32.mrb[13].mxu1 }
 0x1e0   :  { %v1236_v62 = vadd.f32 %v1235_v61, %v1234_v59  ;;  %v1237_v0 = vpop.f32.mrb[14].mxu0  ;;  %v1258_v1 = vadd.f32 %v1257_v63, %v1256_v60  ;;  %v1259_v2 = vpop.f32.mrb[14].mxu1 }
 0x1e1   :  { %v1238_v3 = vpop.f32.mrb[15].mxu0  ;;  %v1260_v6 = vpop.f32.mrb[15].mxu1 }
 0x1e2   :  { %v1039_v4 = vadd.f32 %v1236_v62, %v999_v58 }
 0x1e4   :  { %v1079_v8 = vadd.f32 %v1258_v1, %v1039_v4 }
 0x1e6   :  { %1084 = vst [vmem:[%s1661_s6] sm:$0xff] %v1079_v8 }

</bundles_post_ra>
